<compile_context>
chip_gen: v5e
topology: v5e:2x2
jax: 0.10.0
libtpu: 0.0.40
codegen_flags: <defaults>
</compile_context>

<pallas_src>
import functools

import jax
import jax.numpy as jnp
from jax import lax
from jax.experimental import pallas as pl
from jax.experimental.pallas import tpu as pltpu


def _round_up(x, m):
    return ((x + m - 1) // m) * m


def _mhsa_kernel(gamma_sref, x_ref, w_ref, b_ref, o_ref, qkv_ref, *,
                 n_head, cq, c_sub, r_head, q_off, k_off, v_off,
                 n_valid, n_pad, tk, n_chunk, matmul_dtype, approx_recip):
    """One grid step = one batch element, all heads fused.

    gamma_sref: (n_head,) f32 in SMEM (scalar prefetch)
    x_ref:      (1, C, N_pad)           current batch slice (C = n_head*c_sub)
    w_ref:      (R_total, C)            block-diagonal fused [Wq; Wk; Wv] per head
    b_ref:      (R_total, 1)            fused biases
    o_ref:      (1, C, N_pad)
    qkv_ref:    (R_total, N_pad) f32    VMEM scratch holding the fused projections
    """
    x = x_ref[0]                                                 # (C, N_pad) f32

    # ---- ONE fused MXU push: q/k/v projections for every head ----------------
    proj = jnp.dot(w_ref[...].astype(matmul_dtype), x.astype(matmul_dtype),
                   preferred_element_type=jnp.float32) + b_ref[...]
    qkv_ref[...] = proj                                          # (R_total, N_pad)

    pad_keys = n_valid < n_pad                                   # static python bool

    outs = []
    for h in range(n_head):                                      # static unroll (n_head <= 4)
        base = h * r_head
        gamma = gamma_sref[h]                                    # SMEM scalar read
        q = qkv_ref[pl.ds(base + q_off, cq), :].astype(matmul_dtype)   # (cq, N_pad)

        # ---- flash-style online softmax over key chunks -----------------------
        m0 = jnp.full((1, n_pad), -jnp.inf, dtype=jnp.float32)
        l0 = jnp.zeros((1, n_pad), dtype=jnp.float32)
        a0 = jnp.zeros((c_sub, n_pad), dtype=jnp.float32)

        def body(c, carry):
            m_i, l_i, acc = carry
            start = pl.multiple_of(c * tk, tk)
            k_c = qkv_ref[pl.ds(base + k_off, cq), pl.ds(start, tk)].astype(matmul_dtype)
            v_c = qkv_ref[pl.ds(base + v_off, c_sub), pl.ds(start, tk)].astype(matmul_dtype)
            # scores chunk: s[key_m, query_n] = sum_c k_c[c, m] * q[c, n]
            # (contract the channel dim directly -> no q.T / attn.T transposes)
            s = lax.dot_general(k_c, q, (((0,), (0,)), ((), ())),
                                preferred_element_type=jnp.float32)      # (tk, N_pad)
            if pad_keys:
                key_idx = start + lax.broadcasted_iota(jnp.int32, (tk, 1), 0)
                s = jnp.where(key_idx < n_valid, s, -jnp.inf)
            m_new = jnp.maximum(m_i, jnp.max(s, axis=0, keepdims=True))  # (1, N_pad)
            alpha = jnp.exp(m_i - m_new)                                  # (1, N_pad)
            p = jnp.exp(s - m_new)                                        # (tk, N_pad)
            l_new = alpha * l_i + jnp.sum(p, axis=0, keepdims=True)
            acc_new = alpha * acc + jnp.dot(v_c, p.astype(matmul_dtype),
                                            preferred_element_type=jnp.float32)
            return m_new, l_new, acc_new

        m_i, l_i, acc = lax.fori_loop(0, n_chunk, body, (m0, l0, a0),
                                      unroll=(n_chunk <= 4))

        out_h = acc * pl.reciprocal(l_i, approx=approx_recip)             # (c_sub, N_pad)
        xh = x[h * c_sub:(h + 1) * c_sub, :]
        outs.append(gamma * out_h + xh)

    # single lane-dense store of the whole (C, N_pad) slab
    o_ref[0] = jnp.concatenate(outs, axis=0).astype(o_ref.dtype)


def _pick_key_chunk(n_pad, target=512):
    """Largest multiple of 128 dividing n_pad and <= target (n_pad is a mult. of 128)."""
    best = 128
    c = 128
    while c <= min(n_pad, target):
        if n_pad % c == 0:
            best = c
        c += 128
    return best


def multi_head_self_attention(x, params, n_head, *, key_chunk=None,
                              matmul_dtype=jnp.float32):
    """x: (B, C, H, W) float32 NCHW (same as PyTorch). Returns (B, C, H, W) float32."""
    B, C, H, W = x.shape
    assert C % n_head == 0
    c_sub = C // n_head
    cq = c_sub // 4
    assert cq >= 1, "in_channels per head must be >= 4"
    N = H * W
    n_pad = _round_up(N, 128)

    wq, bq, wk, bk, wv, bv, gamma = params

    tk = key_chunk if key_chunk is not None else _pick_key_chunk(n_pad)
    assert n_pad % tk == 0, "key_chunk must divide the padded spatial size"
    n_chunk = n_pad // tk
    # padding never wipes out a full key chunk -> online-softmax masking is safe
    assert n_pad - N < tk

    # Per-head row layout inside the fused operand (8-row aligned segments).
    q_off = 0
    k_off = _round_up(cq, 8)
    v_off = 2 * _round_up(cq, 8)
    r_head = v_off + _round_up(c_sub, 8)
    r_total = n_head * r_head

    # Block-diagonal fused weights: head h's rows only touch its channel slice.
    w_fused = jnp.zeros((r_total, C), jnp.float32)
    b_fused = jnp.zeros((r_total, 1), jnp.float32)
    for h in range(n_head):
        rb, cb = h * r_head, h * c_sub
        w_fused = w_fused.at[rb + q_off: rb + q_off + cq, cb:cb + c_sub].set(wq[h])
        w_fused = w_fused.at[rb + k_off: rb + k_off + cq, cb:cb + c_sub].set(wk[h])
        w_fused = w_fused.at[rb + v_off: rb + v_off + c_sub, cb:cb + c_sub].set(wv[h])
        b_fused = b_fused.at[rb + q_off: rb + q_off + cq].set(bq[h])
        b_fused = b_fused.at[rb + k_off: rb + k_off + cq].set(bk[h])
        b_fused = b_fused.at[rb + v_off: rb + v_off + c_sub].set(bv[h])

    gamma_s = gamma.reshape(n_head).astype(jnp.float32)

    # (B, C, N_pad): flattened spatial last (lane dim), zero-padded to 128 multiple.
    x_flat = x.reshape(B, C, N)
    if n_pad != N:
        x_flat = jnp.pad(x_flat, ((0, 0), (0, 0), (0, n_pad - N)))

    kernel = functools.partial(
        _mhsa_kernel,
        n_head=n_head, cq=cq, c_sub=c_sub, r_head=r_head,
        q_off=q_off, k_off=k_off, v_off=v_off,
        n_valid=N, n_pad=n_pad, tk=tk, n_chunk=n_chunk,
        matmul_dtype=matmul_dtype,
        approx_recip=(matmul_dtype != jnp.float32))

    out = pl.pallas_call(
        kernel,
        out_shape=jax.ShapeDtypeStruct((B, C, n_pad), jnp.float32),
        grid_spec=pltpu.PrefetchScalarGridSpec(
            num_scalar_prefetch=1,          # gamma -> SMEM (scalar path)
            grid=(B,),                      # one step per batch element
            in_specs=[
                pl.BlockSpec((1, C, n_pad), lambda b, g: (b, 0, 0)),   # x
                pl.BlockSpec((r_total, C), lambda b, g: (0, 0)),       # fused W (resident)
                pl.BlockSpec((r_total, 1), lambda b, g: (0, 0)),       # fused bias (resident)
            ],
            out_specs=pl.BlockSpec((1, C, n_pad), lambda b, g: (b, 0, 0)),
            scratch_shapes=[pltpu.VMEM((r_total, n_pad), jnp.float32)],
        ),
        compiler_params=pltpu.CompilerParams(
            dimension_semantics=("parallel",),
            vmem_limit_bytes=64 * 1024 * 1024),
    )(gamma_s, x_flat, w_fused, b_fused)

    if n_pad != N:
        out = out[:, :, :N]
    # concat heads back along the channel dim (== torch.concat(ret, dim=1))
    return out.reshape(B, C, H, W)


def init_params(key, in_channels, n_head):
    c_sub = in_channels // n_head
    cq = c_sub // 4
    ks = jax.random.split(key, 7)
    wq = jax.random.normal(ks[0], (n_head, cq, c_sub), jnp.float32) * 0.1
    bq = jax.random.normal(ks[1], (n_head, cq, 1), jnp.float32) * 0.1
    wk = jax.random.normal(ks[2], (n_head, cq, c_sub), jnp.float32) * 0.1
    bk = jax.random.normal(ks[3], (n_head, cq, 1), jnp.float32) * 0.1
    wv = jax.random.normal(ks[4], (n_head, c_sub, c_sub), jnp.float32) * 0.1
    bv = jax.random.normal(ks[5], (n_head, c_sub, 1), jnp.float32) * 0.1
    # NOTE: PyTorch initializes gamma = 0 (output would trivially equal input);
    # we use a nonzero deterministic gamma so the attention path is exercised.
    gamma = jax.random.normal(ks[6], (n_head, 1, 1), jnp.float32) * 0.5
    return (wq, bq, wk, bk, wv, bv, gamma)


def reference_jax(x, params, n_head):
    """Pure-JAX reference mirroring the PyTorch forward, for verification."""
    B, C, H, W = x.shape
    c_sub = C // n_head
    N = H * W
    wq, bq, wk, bk, wv, bv, gamma = params
    outs = []
    for h in range(n_head):
        xh = x[:, h * c_sub:(h + 1) * c_sub].reshape(B, c_sub, N)
        q = jnp.einsum('oc,bcn->bon', wq[h], xh) + bq[h][None]          # (B, Cq, N)
        k = jnp.einsum('oc,bcn->bon', wk[h], xh) + bk[h][None]          # (B, Cq, N)
        v = jnp.einsum('oc,bcn->bon', wv[h], xh) + bv[h][None]          # (B, C_sub, N)
        scores = jnp.einsum('bcn,bcm->bnm', q, k)                       # (B, N, N)
        attn = jax.nn.softmax(scores, axis=-1)
        out = jnp.einsum('bcn,bmn->bcm', v, attn)                       # (B, C_sub, N)
        outs.append((gamma[h, 0, 0] * out + xh).reshape(B, c_sub, H, W))
    return jnp.concatenate(outs, axis=1)


if __name__ == "__main__":
    key = jax.random.PRNGKey(0)
    kx, kp, kx2 = jax.random.split(key, 3)

    # ---- Case 1: lane-aligned spatial size (16x16 -> N=256), 2 key chunks ----
    B, C, H, W = 2, 32, 16, 16
    n_head = 2
    x = jax.random.normal(kx, (B, C, H, W), jnp.float32)
    params = init_params(kp, C, n_head)

    y_ref = reference_jax(x, params, n_head)

    y = multi_head_self_attention(x, params, n_head, key_chunk=128)
    y = jax.block_until_ready(y)
    assert y.shape == (B, C, H, W)
    assert jnp.allclose(y, y_ref, atol=2e-4, rtol=2e-4), "f32 path mismatch vs reference"

    # bf16-MXU-input fast path (v6e/v7x): softmax stats, accumulation, residual in f32.
    y_bf16 = multi_head_self_attention(x, params, n_head, key_chunk=128,
                                       matmul_dtype=jnp.bfloat16)
    y_bf16 = jax.block_until_ready(y_bf16)
    assert jnp.allclose(y_bf16, y_ref, atol=5e-2, rtol=5e-2), "bf16 path mismatch vs reference"

    # ---- Case 2: unaligned spatial size (11x11 -> N=121, padded+masked to 128),
    # matching NewGenerator.block1's attention resolution. -----------------------
    H2 = W2 = 11
    x2 = jax.random.normal(kx2, (B, C, H2, W2), jnp.float32)
    y2_ref = reference_jax(x2, params, n_head)
    y2 = jax.block_until_ready(multi_head_self_attention(x2, params, n_head))
    assert y2.shape == (B, C, H2, W2)
    assert jnp.allclose(y2, y2_ref, atol=2e-4, rtol=2e-4), "padded path mismatch vs reference"

    print("KERNEL_OK")
</pallas_src>

<mosaic_0001>
module attributes {stable_mosaic.version = 11 : i64} {
  func.func @_mhsa_kernel(%arg0: i32, %arg1: memref<2xf32, #tpu.memory_space<smem>>, %arg2: memref<1x32x256xf32, #tpu.memory_space<vmem>>, %arg3: memref<64x32xf32, #tpu.memory_space<vmem>>, %arg4: memref<64x1xf32, #tpu.memory_space<vmem>>, %arg5: memref<1x32x256xf32, #tpu.memory_space<vmem>>, %arg6: memref<64x256xf32, #tpu.memory_space<vmem>>) attributes {dimension_semantics = [#tpu.dimension_semantics<parallel>], iteration_bounds = array<i64: 2>, scalar_prefetch = 1 : i64, scratch_operands = 1 : i64, tpu.core_type = #tpu.core_type<tc>, window_params = [{transform_indices = @transform_0, window_bounds = array<i64: 1, 32, 256>}, {pipeline_mode = #tpu.pipeline_mode<synchronous>, transform_indices = @transform_1, window_bounds = array<i64: 64, 32>}, {pipeline_mode = #tpu.pipeline_mode<synchronous>, transform_indices = @transform_2, window_bounds = array<i64: 64, 1>}, {transform_indices = @transform_3, window_bounds = array<i64: 1, 32, 256>}]} {
    %c0 = arith.constant 0 : index
    %c0_0 = arith.constant 0 : index
    %c0_1 = arith.constant 0 : index
    %0 = vector.load %arg2[%c0, %c0_0, %c0_1] : memref<1x32x256xf32, #tpu.memory_space<vmem>>, vector<1x32x256xf32>
    %1 = vector.shape_cast %0 : vector<1x32x256xf32> to vector<32x256xf32>
    %c0_2 = arith.constant 0 : index
    %c0_3 = arith.constant 0 : index
    %2 = vector.load %arg3[%c0_2, %c0_3] : memref<64x32xf32, #tpu.memory_space<vmem>>, vector<64x32xf32>
    %cst = arith.constant dense<0.000000e+00> : vector<64x256xf32>
    %3 = tpu.matmul %2, %1, %cst {dimension_numbers = #tpu.dot_dimension_numbers<[1], [0], [0], [1], [0, 0, 1, 1], [], []>} : vector<64x32xf32>, vector<32x256xf32>, vector<64x256xf32> -> vector<64x256xf32>
    %c0_4 = arith.constant 0 : index
    %c0_5 = arith.constant 0 : index
    %4 = vector.load %arg4[%c0_4, %c0_5] : memref<64x1xf32, #tpu.memory_space<vmem>>, vector<64x1xf32>
    %5 = vector.broadcast %4 : vector<64x1xf32> to vector<64x256xf32>
    %6 = arith.addf %3, %5 : vector<64x256xf32>
    %c0_6 = arith.constant 0 : index
    %c0_7 = arith.constant 0 : index
    %7 = vector.load %arg6[%c0_6, %c0_7] : memref<64x256xf32, #tpu.memory_space<vmem>>, vector<64x256xf32>
    tpu.vector_store %arg6[%c0_6, %c0_7], %6 {strides = array<i32>} : memref<64x256xf32, #tpu.memory_space<vmem>>, vector<64x256xf32>,
    %c0_8 = arith.constant 0 : index
    %8 = memref.load %arg1[%c0_8] : memref<2xf32, #tpu.memory_space<smem>>
    %c0_9 = arith.constant 0 : index
    %c0_10 = arith.constant 0 : index
    %9 = vector.load %arg6[%c0_9, %c0_10] : memref<64x256xf32, #tpu.memory_space<vmem>>, vector<4x256xf32>
    %cst_11 = arith.constant 0xFF800000 : f32
    %10 = vector.broadcast %cst_11 : f32 to vector<1x256xf32>
    %cst_12 = arith.constant 0.000000e+00 : f32
    %11 = vector.broadcast %cst_12 : f32 to vector<1x256xf32>
    %cst_13 = arith.constant 0.000000e+00 : f32
    %12 = vector.broadcast %cst_13 : f32 to vector<16x256xf32>
    %c0_i32 = arith.constant 0 : i32
    %c128_i32 = arith.constant 128 : i32
    %13 = arith.muli %c0_i32, %c128_i32 : i32
    %14 = tpu.assume_multiple %13, 128 : i32
    %c8 = arith.constant 8 : index
    %15 = arith.index_cast %14 : i32 to index
    %16 = vector.load %arg6[%c8, %15] : memref<64x256xf32, #tpu.memory_space<vmem>>, vector<4x128xf32>
    %c16 = arith.constant 16 : index
    %17 = arith.index_cast %14 : i32 to index
    %18 = vector.load %arg6[%c16, %17] : memref<64x256xf32, #tpu.memory_space<vmem>>, vector<16x128xf32>
    %cst_14 = arith.constant dense<0.000000e+00> : vector<128x256xf32>
    %19 = tpu.matmul %16, %9, %cst_14 {dimension_numbers = #tpu.dot_dimension_numbers<[0], [0], [1], [1], [0, 1, 1, 1], [], []>} : vector<4x128xf32>, vector<4x256xf32>, vector<128x256xf32> -> vector<128x256xf32>
    %cst_15 = arith.constant dense<0xFF800000> : vector<256xf32>
    %20 = vector.multi_reduction <maximumf>, %19, %cst_15 [0] : vector<128x256xf32> to vector<256xf32>
    %21 = vector.shape_cast %20 : vector<256xf32> to vector<1x256xf32>
    %22 = arith.maximumf %10, %21 : vector<1x256xf32>
    %23 = arith.subf %10, %22 : vector<1x256xf32>
    %24 = math.exp %23 : vector<1x256xf32>
    %25 = vector.broadcast %22 : vector<1x256xf32> to vector<128x256xf32>
    %26 = arith.subf %19, %25 : vector<128x256xf32>
    %27 = math.exp %26 : vector<128x256xf32>
    %28 = arith.mulf %24, %11 : vector<1x256xf32>
    %cst_16 = arith.constant dense<0.000000e+00> : vector<256xf32>
    %29 = vector.multi_reduction <add>, %27, %cst_16 [0] : vector<128x256xf32> to vector<256xf32>
    %30 = vector.shape_cast %29 : vector<256xf32> to vector<1x256xf32>
    %31 = arith.addf %28, %30 : vector<1x256xf32>
    %32 = vector.broadcast %24 : vector<1x256xf32> to vector<16x256xf32>
    %33 = arith.mulf %32, %12 : vector<16x256xf32>
    %cst_17 = arith.constant dense<0.000000e+00> : vector<16x256xf32>
    %34 = tpu.matmul %18, %27, %cst_17 {dimension_numbers = #tpu.dot_dimension_numbers<[1], [0], [0], [1], [0, 0, 1, 1], [], []>} : vector<16x128xf32>, vector<128x256xf32>, vector<16x256xf32> -> vector<16x256xf32>
    %35 = arith.addf %33, %34 : vector<16x256xf32>
    %c1_i32 = arith.constant 1 : i32
    %c128_i32_18 = arith.constant 128 : i32
    %36 = arith.muli %c1_i32, %c128_i32_18 : i32
    %37 = tpu.assume_multiple %36, 128 : i32
    %c8_19 = arith.constant 8 : index
    %38 = arith.index_cast %37 : i32 to index
    %39 = vector.load %arg6[%c8_19, %38] : memref<64x256xf32, #tpu.memory_space<vmem>>, vector<4x128xf32>
    %c16_20 = arith.constant 16 : index
    %40 = arith.index_cast %37 : i32 to index
    %41 = vector.load %arg6[%c16_20, %40] : memref<64x256xf32, #tpu.memory_space<vmem>>, vector<16x128xf32>
    %cst_21 = arith.constant dense<0.000000e+00> : vector<128x256xf32>
    %42 = tpu.matmul %39, %9, %cst_21 {dimension_numbers = #tpu.dot_dimension_numbers<[0], [0], [1], [1], [0, 1, 1, 1], [], []>} : vector<4x128xf32>, vector<4x256xf32>, vector<128x256xf32> -> vector<128x256xf32>
    %cst_22 = arith.constant dense<0xFF800000> : vector<256xf32>
    %43 = vector.multi_reduction <maximumf>, %42, %cst_22 [0] : vector<128x256xf32> to vector<256xf32>
    %44 = vector.shape_cast %43 : vector<256xf32> to vector<1x256xf32>
    %45 = arith.maximumf %22, %44 : vector<1x256xf32>
    %46 = arith.subf %22, %45 : vector<1x256xf32>
    %47 = math.exp %46 : vector<1x256xf32>
    %48 = vector.broadcast %45 : vector<1x256xf32> to vector<128x256xf32>
    %49 = arith.subf %42, %48 : vector<128x256xf32>
    %50 = math.exp %49 : vector<128x256xf32>
    %51 = arith.mulf %47, %31 : vector<1x256xf32>
    %cst_23 = arith.constant dense<0.000000e+00> : vector<256xf32>
    %52 = vector.multi_reduction <add>, %50, %cst_23 [0] : vector<128x256xf32> to vector<256xf32>
    %53 = vector.shape_cast %52 : vector<256xf32> to vector<1x256xf32>
    %54 = arith.addf %51, %53 : vector<1x256xf32>
    %55 = vector.broadcast %47 : vector<1x256xf32> to vector<16x256xf32>
    %56 = arith.mulf %55, %35 : vector<16x256xf32>
    %cst_24 = arith.constant dense<0.000000e+00> : vector<16x256xf32>
    %57 = tpu.matmul %41, %50, %cst_24 {dimension_numbers = #tpu.dot_dimension_numbers<[1], [0], [0], [1], [0, 0, 1, 1], [], []>} : vector<16x128xf32>, vector<128x256xf32>, vector<16x256xf32> -> vector<16x256xf32>
    %58 = arith.addf %56, %57 : vector<16x256xf32>
    %c2_i32 = arith.constant 2 : i32
    %59 = tpu.reciprocal %54 : vector<1x256xf32> -> vector<1x256xf32>
    %60 = vector.broadcast %59 : vector<1x256xf32> to vector<16x256xf32>
    %61 = arith.mulf %58, %60 : vector<16x256xf32>
    %62 = vector.extract_strided_slice %1 {offsets = [0, 0], sizes = [16, 256], strides = [1, 1]} : vector<32x256xf32> to vector<16x256xf32>
    %63 = vector.broadcast %8 : f32 to vector<16x256xf32>
    %64 = arith.mulf %63, %61 : vector<16x256xf32>
    %65 = arith.addf %64, %62 : vector<16x256xf32>
    %c1 = arith.constant 1 : index
    %66 = memref.load %arg1[%c1] : memref<2xf32, #tpu.memory_space<smem>>
    %c32 = arith.constant 32 : index
    %c0_25 = arith.constant 0 : index
    %67 = vector.load %arg6[%c32, %c0_25] : memref<64x256xf32, #tpu.memory_space<vmem>>, vector<4x256xf32>
    %cst_26 = arith.constant 0xFF800000 : f32
    %68 = vector.broadcast %cst_26 : f32 to vector<1x256xf32>
    %cst_27 = arith.constant 0.000000e+00 : f32
    %69 = vector.broadcast %cst_27 : f32 to vector<1x256xf32>
    %cst_28 = arith.constant 0.000000e+00 : f32
    %70 = vector.broadcast %cst_28 : f32 to vector<16x256xf32>
    %c0_i32_29 = arith.constant 0 : i32
    %c128_i32_30 = arith.constant 128 : i32
    %71 = arith.muli %c0_i32_29, %c128_i32_30 : i32
    %72 = tpu.assume_multiple %71, 128 : i32
    %c40 = arith.constant 40 : index
    %73 = arith.index_cast %72 : i32 to index
    %74 = vector.load %arg6[%c40, %73] : memref<64x256xf32, #tpu.memory_space<vmem>>, vector<4x128xf32>
    %c48 = arith.constant 48 : index
    %75 = arith.index_cast %72 : i32 to index
    %76 = vector.load %arg6[%c48, %75] : memref<64x256xf32, #tpu.memory_space<vmem>>, vector<16x128xf32>
    %cst_31 = arith.constant dense<0.000000e+00> : vector<128x256xf32>
    %77 = tpu.matmul %74, %67, %cst_31 {dimension_numbers = #tpu.dot_dimension_numbers<[0], [0], [1], [1], [0, 1, 1, 1], [], []>} : vector<4x128xf32>, vector<4x256xf32>, vector<128x256xf32> -> vector<128x256xf32>
    %cst_32 = arith.constant dense<0xFF800000> : vector<256xf32>
    %78 = vector.multi_reduction <maximumf>, %77, %cst_32 [0] : vector<128x256xf32> to vector<256xf32>
    %79 = vector.shape_cast %78 : vector<256xf32> to vector<1x256xf32>
    %80 = arith.maximumf %68, %79 : vector<1x256xf32>
    %81 = arith.subf %68, %80 : vector<1x256xf32>
    %82 = math.exp %81 : vector<1x256xf32>
    %83 = vector.broadcast %80 : vector<1x256xf32> to vector<128x256xf32>
    %84 = arith.subf %77, %83 : vector<128x256xf32>
    %85 = math.exp %84 : vector<128x256xf32>
    %86 = arith.mulf %82, %69 : vector<1x256xf32>
    %cst_33 = arith.constant dense<0.000000e+00> : vector<256xf32>
    %87 = vector.multi_reduction <add>, %85, %cst_33 [0] : vector<128x256xf32> to vector<256xf32>
    %88 = vector.shape_cast %87 : vector<256xf32> to vector<1x256xf32>
    %89 = arith.addf %86, %88 : vector<1x256xf32>
    %90 = vector.broadcast %82 : vector<1x256xf32> to vector<16x256xf32>
    %91 = arith.mulf %90, %70 : vector<16x256xf32>
    %cst_34 = arith.constant dense<0.000000e+00> : vector<16x256xf32>
    %92 = tpu.matmul %76, %85, %cst_34 {dimension_numbers = #tpu.dot_dimension_numbers<[1], [0], [0], [1], [0, 0, 1, 1], [], []>} : vector<16x128xf32>, vector<128x256xf32>, vector<16x256xf32> -> vector<16x256xf32>
    %93 = arith.addf %91, %92 : vector<16x256xf32>
    %c1_i32_35 = arith.constant 1 : i32
    %c128_i32_36 = arith.constant 128 : i32
    %94 = arith.muli %c1_i32_35, %c128_i32_36 : i32
    %95 = tpu.assume_multiple %94, 128 : i32
    %c40_37 = arith.constant 40 : index
    %96 = arith.index_cast %95 : i32 to index
    %97 = vector.load %arg6[%c40_37, %96] : memref<64x256xf32, #tpu.memory_space<vmem>>, vector<4x128xf32>
    %c48_38 = arith.constant 48 : index
    %98 = arith.index_cast %95 : i32 to index
    %99 = vector.load %arg6[%c48_38, %98] : memref<64x256xf32, #tpu.memory_space<vmem>>, vector<16x128xf32>
    %cst_39 = arith.constant dense<0.000000e+00> : vector<128x256xf32>
    %100 = tpu.matmul %97, %67, %cst_39 {dimension_numbers = #tpu.dot_dimension_numbers<[0], [0], [1], [1], [0, 1, 1, 1], [], []>} : vector<4x128xf32>, vector<4x256xf32>, vector<128x256xf32> -> vector<128x256xf32>
    %cst_40 = arith.constant dense<0xFF800000> : vector<256xf32>
    %101 = vector.multi_reduction <maximumf>, %100, %cst_40 [0] : vector<128x256xf32> to vector<256xf32>
    %102 = vector.shape_cast %101 : vector<256xf32> to vector<1x256xf32>
    %103 = arith.maximumf %80, %102 : vector<1x256xf32>
    %104 = arith.subf %80, %103 : vector<1x256xf32>
    %105 = math.exp %104 : vector<1x256xf32>
    %106 = vector.broadcast %103 : vector<1x256xf32> to vector<128x256xf32>
    %107 = arith.subf %100, %106 : vector<128x256xf32>
    %108 = math.exp %107 : vector<128x256xf32>
    %109 = arith.mulf %105, %89 : vector<1x256xf32>
    %cst_41 = arith.constant dense<0.000000e+00> : vector<256xf32>
    %110 = vector.multi_reduction <add>, %108, %cst_41 [0] : vector<128x256xf32> to vector<256xf32>
    %111 = vector.shape_cast %110 : vector<256xf32> to vector<1x256xf32>
    %112 = arith.addf %109, %111 : vector<1x256xf32>
    %113 = vector.broadcast %105 : vector<1x256xf32> to vector<16x256xf32>
    %114 = arith.mulf %113, %93 : vector<16x256xf32>
    %cst_42 = arith.constant dense<0.000000e+00> : vector<16x256xf32>
    %115 = tpu.matmul %99, %108, %cst_42 {dimension_numbers = #tpu.dot_dimension_numbers<[1], [0], [0], [1], [0, 0, 1, 1], [], []>} : vector<16x128xf32>, vector<128x256xf32>, vector<16x256xf32> -> vector<16x256xf32>
    %116 = arith.addf %114, %115 : vector<16x256xf32>
    %c2_i32_43 = arith.constant 2 : i32
    %117 = tpu.reciprocal %112 : vector<1x256xf32> -> vector<1x256xf32>
    %118 = vector.broadcast %117 : vector<1x256xf32> to vector<16x256xf32>
    %119 = arith.mulf %116, %118 : vector<16x256xf32>
    %120 = vector.extract_strided_slice %1 {offsets = [16, 0], sizes = [16, 256], strides = [1, 1]} : vector<32x256xf32> to vector<16x256xf32>
    %121 = vector.broadcast %66 : f32 to vector<16x256xf32>
    %122 = arith.mulf %121, %119 : vector<16x256xf32>
    %123 = arith.addf %122, %120 : vector<16x256xf32>
    %124 = tpu.concatenate %65, %123 in 0 : vector<16x256xf32>, vector<16x256xf32> -> vector<32x256xf32>
    %c0_44 = arith.constant 0 : index
    %c0_45 = arith.constant 0 : index
    %c0_46 = arith.constant 0 : index
    %125 = vector.load %arg5[%c0_44, %c0_45, %c0_46] : memref<1x32x256xf32, #tpu.memory_space<vmem>>, vector<1x32x256xf32>
    %126 = vector.shape_cast %125 : vector<1x32x256xf32> to vector<32x256xf32>
    %127 = vector.shape_cast %124 : vector<32x256xf32> to vector<1x32x256xf32>
    tpu.vector_store %arg5[%c0_44, %c0_45, %c0_46], %127 {strides = array<i32>} : memref<1x32x256xf32, #tpu.memory_space<vmem>>, vector<1x32x256xf32>,
    return
  }
  func.func @transform_0(%arg0: i32, %arg1: memref<2xf32, #tpu.memory_space<smem>>) -> (i32, i32, i32) {
    %c0_i32 = arith.constant 0 : i32
    %c0_i32_0 = arith.constant 0 : i32
    %c0_i32_1 = arith.constant 0 : i32
    return %arg0, %c0_i32, %c0_i32_0 : i32, i32, i32
  }
  func.func @transform_1(%arg0: i32, %arg1: memref<2xf32, #tpu.memory_space<smem>>) -> (i32, i32) {
    %c0_i32 = arith.constant 0 : i32
    %c0_i32_0 = arith.constant 0 : i32
    %c0_i32_1 = arith.constant 0 : i32
    return %c0_i32, %c0_i32_0 : i32, i32
  }
  func.func @transform_2(%arg0: i32, %arg1: memref<2xf32, #tpu.memory_space<smem>>) -> (i32, i32) {
    %c0_i32 = arith.constant 0 : i32
    %c0_i32_0 = arith.constant 0 : i32
    %c0_i32_1 = arith.constant 0 : i32
    return %c0_i32, %c0_i32_0 : i32, i32
  }
  func.func @transform_3(%arg0: i32, %arg1: memref<2xf32, #tpu.memory_space<smem>>) -> (i32, i32, i32) {
    %c0_i32 = arith.constant 0 : i32
    %c0_i32_0 = arith.constant 0 : i32
    %c0_i32_1 = arith.constant 0 : i32
    return %arg0, %c0_i32, %c0_i32_0 : i32, i32, i32
  }
}

</mosaic_0001>

<bundles_post_ra>
// kernel: tpu_custom_call.1
= control target key start
LH: loop header
LB: loop body
LE: loop exit
PB: predicated region body
PF: predicated region fallthrough
CT: control target
= control target key end

     0   :  { %s2966_s18 = smov [#allocation4]   ;;  %s4495_s0 = inlined_call_operand.vmem [shape: f32[2], index: 0, kind: input, shape index: {}]   ;;  %s4496_s1 = inlined_call_operand.vmem [shape: f32[2,32,256], index: 1, kind: input, shape index: {}]   ;;  %s4497_s2 = inlined_call_operand.vmem [shape: f32[64,32], index: 2, kind: input, shape index: {}]   ;;  %s4498_s3 = inlined_call_operand.vmem [shape: f32[64,1], index: 3, kind: input, shape index: {}]   ;;  %s4499_s4 = inlined_call_operand.hbm [shape: f32[2,32,256], index: 4, kind: output, shape index: {}]  }
   0x1   :  { %s10_s17 = sshll.u32 %s4495_s0, 4  ;;  %s11_s17 = int_to_ptr.vmem [resolvable:$true] %s10_s17 }
   0x2   :  { %13 = dma.vmem_to_smem %s11_s17, 16, %s2966_s18, [#allocation3] }
   0x3   :  { %2944 = dma.done.wait [#allocation3], 16 }
   0x4   :  { %2945 = vsyncadd [#allocation3], 4294967280 }
   0x5   :  { %16 = sfence }
   0x6   :  { %17 = vsyncpa [#allocation6], 0 }
   0x7   :  { %19 = vsyncpa [#allocation6 + $0x1], 0  ;;  %s2998_s19 = smov 0   ;;  %s3000_s20 = smov 0  }
   0x8   :  { %s3002_s21 = smov 0   ;;  %s3004_s22 = smov 0  }
   0x9 LB: > { %s3019_s0 = sadd.s32 4294967295, %s2964_s22   ;;  %s2378_s23 = sadd.s32 4294967294, %s2964_s22   ;;  %s2964_s22 = sphi %s3004_s22, %s4586_s22   ;;  %s2960_s21 = sphi %s3002_s21, %s4585_s21   ;;  %s2956_s20 = sphi %s3000_s20, %s4584_s20   ;;  %s2952_s19 = sphi %s2998_s19, %s4583_s19  }
   0xa   : > { %s3023_s24 = sadd.s32 1, %s2964_s22   ;;  %s100_s25 = sadd.s32 1, %s2960_s21 }
   0xb   : > { %s97_s26 = ssub.s32 %s2964_s22, %s3023_s24  ;;  %p110_p0 = scmp.ne.s32.totalorder %s2960_s21, %s2956_s20 }
   0xc   : > { %p98_p1 = scmp.eq.s32.totalorder %s97_s26, 0  ;;  %p111_p2 = scmp.eq.s32.totalorder %s3019_s0, 1 }
   0xd   : > { %p116_p3 = scmp.ne.s32.totalorder %s2956_s20, %s2952_s19  ;;  %p117_p4 = scmp.eq.s32.totalorder %s2378_s23, 1 }
   0xe   : > { %s3034_s27 = scalar_select %p98_p1, %s2960_s21, %s100_s25  }
   0xf   : > { %p3036_p5 = por %p111_p2, %p110_p0  ;;  %p3040_p6 = por %p117_p4, %p116_p3 }
  0x10   : > { %p2381_p7 = scmp.ge.s32.totalorder %s2964_s22, 1  ;;  %p149_p8 = scmp.lt.s32.totalorder %s2964_s22, 3 }
  0x12   : > { %p150_p9 = pnand %p2381_p7, %p149_p8 }
  0x14   : > { %153 = sbr.rel (%p150_p9) target bundleno = 1847 (0x737), region = 32 }
  0x19   : > { %p173_p10 = scmp.lt.s32.totalorder %s3019_s0, 1  ;;  %v195_v0 = vld [vmem:[%s4498_s3 + $0x8] sm:$0xff]  ;;  %v2967_v1 = vmov 0   ;;  %v197_v2 = vld [vmem:[%s4498_s3 + $0x18] sm:$0xff]  ;;  %v186_v11 = vld [vmem:[%s4497_s2] sm:$0xff]  ;;  %vm242_vm0 = vcmask 261120  }
  0x1a   : > { %2597 = vset.pattern.permute.xlu0 %v2967_v1  ;;  %2599 = vset.pattern.permute.xlu2 %v2967_v1  ;;  %v190_v12 = vld [vmem:[%s4497_s2 + $0x20] sm:$0xff]  ;;  %v187_v14 = vld [vmem:[%s4497_s2 + $0x8] sm:$0xff]  ;;  %v192_v20 = vld [vmem:[%s4497_s2 + $0x30] sm:$0xff]  ;;  %vm452_vm1 = vcmask 1043456   ;;  %vm403_vm2 = vcmask 31744   ;;  %s170_s7 = sand.u32 1, %s2956_s20  }
  0x1b   : > { %s174_s6 = scalar_select %p173_p10, %s3019_s0, 1  ;;  %209 = vperm.xlu0 %2597, %v195_v0   ;;  %219 = vperm.xlu2 %2599, %v197_v2   ;;  %v194_v13 = vld [vmem:[%s4498_s3] sm:$0xff]  ;;  %v191_v15 = vld [vmem:[%s4497_s2 + $0x28] sm:$0xff]  ;;  %v193_v22 = vld [vmem:[%s4497_s2 + $0x38] sm:$0xff] }
  0x1c   : > { %v199_v16 = vld [vmem:[%s4498_s3 + $0x28] sm:$0xff]  ;;  %v198_v17 = vld [vmem:[%s4498_s3 + $0x20] sm:$0xff]  ;;  %v196_v60 = vld [vmem:[%s4498_s3 + $0x10] sm:$0xff]  ;;  %s2382_s8 = sshll.u32 %s170_s7, 6  ;;  %s2469_s10 = sld [smem:[#allocation4 + $0x1]] }
  0x1d   : > { %s2543_s9 = sshll.u32 %s174_s6, 6  ;;  %v188_v2 = vld [vmem:[%s4497_s2 + $0x10] sm:$0xff]  ;;  %s365_s6 = sld [smem:[#allocation4]] }
  0x1e   : > { %s3059_s12 = scalar_lea.vmem %s4496_s1, %s2543_s9  ;;  %s3909_s9 = scalar_lea.vmem [#allocation5], %s2382_s8 }
  0x1f   : > { %v184_v3 = vld [vmem:[%s3059_s12 + $0x30] sm:$0xff]  ;;  %v185_v4 = vld [vmem:[%s3059_s12 + $0x38] sm:$0xff]  ;;  %v182_v5 = vld [vmem:[%s3059_s12 + $0x20] sm:$0xff]  ;;  %s2544_s11 = sshll.u32 %s3019_s0, 6  ;;  %s2313_s16 = sshll.u32 %s3909_s9, 4  ;;  %s2314_s16 = int_to_ptr.vmem [resolvable:$true] %s2313_s16 }
  0x20   : > { %279 = vmatpush.msra.mxu0 %v184_v3  ;;  %2545 = vmatpush.msra.mxu2 %v184_v3  ;;  %v183_v6 = vld [vmem:[%s3059_s12 + $0x28] sm:$0xff]  ;;  %v180_v7 = vld [vmem:[%s3059_s12 + $0x10] sm:$0xff]  ;;  %v181_v8 = vld [vmem:[%s3059_s12 + $0x18] sm:$0xff]  ;;  %s2312_s15 = scalar_lea.hbm %s4499_s4, %s2544_s11  ;;  %s2301_s0 = scalar_lea.sflag [#allocation6], %s170_s7 }
  0x21   : > { %320 = vmatpush.msra.mxu1 %v185_v4  ;;  %2549 = vmatpush.msra.mxu3 %v185_v4  ;;  %v178_v9 = vld [vmem:[%s3059_s12] sm:$0xff]  ;;  %v179_v10 = vld [vmem:[%s3059_s12 + $0x8] sm:$0xff]  ;;  %v200_v3 = vld [vmem:[%s4498_s3 + $0x30] sm:$0xff]  ;;  %s2315_s17 = sshll.u32 %s2312_s15, 4  ;;  %s2920_s30 = scalar_lea.hbm %s4499_s4, 128  ;;  %s2316_s17 = int_to_ptr.hbm [resolvable:$true] %s2315_s17 }
  0x22   : > { %280 = vmatpush.msra.mxu0 %v182_v5  ;;  %2546 = vmatpush.msra.mxu2 %v182_v5  ;;  %s2914_s18 = sshra.s32 %s2316_s17, 4  ;;  %s2915_s18 = int_to_ptr.hbm [resolvable:$true] %s2914_s18 }
  0x23   : > { %321 = vmatpush.msra.mxu1 %v183_v6  ;;  %2550 = vmatpush.msra.mxu3 %v183_v6  ;;  %s2916_s23 = scalar_lea.hbm %s2915_s18, 64  ;;  %p2921_p0 = scmp.lt.s32.totalorder %s2915_s18, %s4499_s4 }
  0x24   : > { %281 = vmatpush.msra.mxu0 %v180_v7  ;;  %2547 = vmatpush.msra.mxu2 %v180_v7  ;;  %v189_v7 = vld [vmem:[%s4497_s2 + $0x18] sm:$0xff]  ;;  %p2917_p11 = scmp.ne.s32.totalorder %s2915_s18, %s2916_s23  ;;  %p2922_p1 = scmp.lt.s32.totalorder %s2920_s30, %s2916_s23 }
  0x25   : > { %322 = vmatpush.msra.mxu1 %v181_v8  ;;  %2551 = vmatpush.msra.mxu3 %v181_v8  ;;  %v201_v8 = vld [vmem:[%s4498_s3 + $0x38] sm:$0xff] }
  0x26   : > { %282 = vmatpush.msra.mxu0 %v178_v9  ;;  %2548 = vmatpush.msra.mxu2 %v178_v9  ;;  %p2918_p12 = pnand %p2917_p11, %p3036_p5  ;;  %p2923_p2 = por %p2922_p1, %p2921_p0 }
  0x27   : > { %323 = vmatpush.msra.mxu1 %v179_v10  ;;  %2552 = vmatpush.msra.mxu3 %v179_v10 }
  0x28   : > { %2385 = vmatmul.msk.f32.vlgmr.msra.gmra.mxu0 %vm242_vm0, %v186_v11  ;;  %2389 = vmatmul.msk.f32.vlgmr.msra.gmra.mxu2 %vm242_vm0, %v190_v12  ;;  %p2919_p13 = pneg %p2918_p12 }
  0x29   : > { %2393 = vmatmul.msk.f32.vlgmr.msra.gmra.mxu1 %vm242_vm0, %v186_v11  ;;  %2397 = vmatmul.msk.f32.vlgmr.msra.gmra.mxu3 %vm242_vm0, %v190_v12 }
  0x2a   : > { %204 = vperm.xlu0 %2597, %v194_v13   ;;  %p2924_p3 = pnand %p2923_p2, %p2919_p13 }
  0x30   : > { %2386 = vmatmul.msk.f32.gmra.mxu0 %vm242_vm0, %v187_v14  ;;  %2390 = vmatmul.msk.f32.gmra.mxu2 %vm242_vm0, %v191_v15 }
  0x31   : > { %2394 = vmatmul.msk.f32.gmra.mxu1 %vm242_vm0, %v187_v14  ;;  %2398 = vmatmul.msk.f32.gmra.mxu3 %vm242_vm0, %v191_v15 }
  0x32   : > { %229 = vperm.xlu0 %2597, %v199_v16  }
  0x38   : > { %2391 = vmatmul.msk.f32.gmra.mxu2 %vm242_vm0, %v192_v20  ;;  %2387 = vmatmul.msk.f32.gmra.mxu0 %vm242_vm0, %v188_v2 }
  0x39   : > { %2399 = vmatmul.msk.f32.gmra.mxu3 %vm242_vm0, %v192_v20  ;;  %2395 = vmatmul.msk.f32.gmra.mxu1 %vm242_vm0, %v188_v2 }
  0x3a   : > { %224 = vperm.xlu0 %2597, %v198_v17  }
  0x40   : > { %2392 = vmatmul.msk.f32.gmra.mxu2 %vm242_vm0, %v193_v22  ;;  %2388 = vmatmul.msk.f32.gmra.mxu0 %vm242_vm0, %v189_v7 }
  0x41   : > { %2400 = vmatmul.msk.f32.gmra.mxu3 %vm242_vm0, %v193_v22  ;;  %2396 = vmatmul.msk.f32.gmra.mxu1 %vm242_vm0, %v189_v7 }
  0x75   : > { %v3117_v45 = vpop.permute.xlu2 %219 }
  0x8d   : > { %v210_v18 = vpop.permute.xlu0 %209 }
  0x9c   : > { %v205_v19 = vpop.permute.xlu0 %204 }
  0xa4   : > { %v230_v21 = vpop.permute.xlu0 %229 }
  0xa5   : > { %v284_v23 = vpop.f32.mrf.mxu0 }
  0xa6   : > { %v285_v24 = vadd.f32 %v284_v23, %v205_v19  ;;  %v325_v25 = vpop.f32.mrf.mxu1 }
  0xa7   : > { %v326_v26 = vadd.f32 %v325_v25, %v205_v19 }
  0xa8   : > { %349 = vst [vmem:[#allocation2 + $0x30] sm:$0xff] %v285_v24 }
  0xa9   : > { %350 = vst [vmem:[#allocation2] sm:$0xff] %v326_v26 }
  0xab   : > { %v296_v27 = vpop.f32.mrf.mxu2 }
  0xac   : > { %v337_v28 = vpop.f32.mrf.mxu3  ;;  %v225_v29 = vpop.permute.xlu0 %224 }
  0xad   : > { %v297_v30 = vadd.f32 %v296_v27, %v225_v29  ;;  %v338_v31 = vadd.f32 %v337_v28, %v225_v29  ;;  %v287_v32 = vpop.f32.mrf.mxu0 }
  0xae   : > { %v288_v33 = vadd.f32 %v287_v32, %v210_v18  ;;  %v328_v34 = vpop.f32.mrf.mxu1 }
  0xaf   : > { %357 = vst [vmem:[#allocation2 + $0x40] sm:$0xff] %v297_v30  ;;  %v329_v35 = vadd.f32 %v328_v34, %v210_v18  ;;  %v3108_v36 = vld [vmem:[#allocation2 + $0x30] sm:$0xf] }
  0xb0   : > { %358 = vst [vmem:[#allocation2 + $0x20] sm:$0xff] %v338_v31  ;;  %2401 = vmatpush.msk.msrb.mxu2 %vm452_vm1, %v3108_v36  ;;  %v3112_v37 = vld [vmem:[#allocation2] sm:$0xf] }
  0xb1   : > { %351 = vst [vmem:[#allocation2 + $0x58] sm:$0xff] %v288_v33  ;;  %2418 = vmatpush.msk.msrb.mxu3 %vm452_vm1, %v3112_v37 }
  0xb2   : > { %352 = vst [vmem:[#allocation2 + $0x18] sm:$0xff] %v329_v35 }
  0xb3   : > { %v299_v38 = vpop.f32.mrf.mxu2 }
  0xb4   : > { %v300_v39 = vadd.f32 %v299_v38, %v230_v21  ;;  %v340_v40 = vpop.f32.mrf.mxu3 }
  0xb5   : > { %v341_v41 = vadd.f32 %v340_v40, %v230_v21 }
  0xb6   : > { %359 = vst [vmem:[#allocation2 + $0x10] sm:$0xff] %v300_v39 }
  0xb7   : > { %360 = vst [vmem:[#allocation2 + $0x38] sm:$0xff] %v341_v41 }
  0xb8   : > { %v368_v42 = vld [vmem:[#allocation2 + $0x58] sm:$0xf] }
  0xb9   : > { %v830_v43 = vld [vmem:[#allocation2 + $0x18] sm:$0xf]  ;;  %371 = vxpose.xlu1.b32.start.end [1/1] (short) %v368_v42, 128 }
  0xba   : > { %833 = vxpose.xlu2.b32.start.end [1/1] (short) %v830_v43, 128 }
  0xbb   : > { %v302_v23 = vpop.f32.mrf.mxu2 }
  0xbc   : > { %v343_v26 = vpop.f32.mrf.mxu3 }
  0xbd   : > { %v1333_v44 = vld [vmem:[#allocation2 + $0x10] sm:$0xf] }
  0xbe   : > { %1336 = vxpose.xlu0.b32.start.end [1/1] (short) %v1333_v44, 128  ;;  %v1792_v19 = vld [vmem:[#allocation2 + $0x38] sm:$0xf] }
  0xc3   : > { %v305_v30 = vpop.f32.mrf.mxu2 }
  0xc4   : > { %v346_v31 = vpop.f32.mrf.mxu3 }
 0x10c   : > { %2598 = vset.pattern.permute.xlu1 %v2967_v1 }
 0x153   : > { %v3119_v46 = vpop.trf.xlu2 }
 0x15b   : > { %v3123_v48 = vpop.trf.xlu2 }
 0x15d   : > { %v387_v47 = vpop.trf.xlu1 }
 0x15e   : > { %2402 = vmatmul.msk.f32.vlgmr.msrb.gmra.mxu2 %vm403_vm2, %v387_v47  ;;  %2419 = vmatmul.msk.f32.vlgmr.msrb.gmra.mxu3 %vm403_vm2, %v387_v47 }
 0x162   : > { %v3135_v54 = vpop.trf.xlu0 }
 0x163   : > { %v3127_v50 = vpop.trf.xlu2  ;;  %4529 = vst [vmem:[#allocation9_spill] sm:$0xff] %v3135_v54 }
 0x165   : > { %v388_v49 = vpop.trf.xlu1 }
 0x166   : > { %2403 = vmatmul.msk.f32.gmra.mxu2 %vm403_vm2, %v388_v49  ;;  %2420 = vmatmul.msk.f32.gmra.mxu3 %vm403_vm2, %v388_v49 }
 0x16a   : > { %v3141_v57 = vpop.trf.xlu0 }
 0x16b   : > { %v3131_v52 = vpop.trf.xlu2  ;;  %4530 = vst [vmem:[#allocation10_spill] sm:$0xff] %v3141_v57 }
 0x16d   : > { %v389_v51 = vpop.trf.xlu1 }
 0x16e   : > { %2404 = vmatmul.msk.f32.gmra.mxu2 %vm403_vm2, %v389_v51  ;;  %2421 = vmatmul.msk.f32.gmra.mxu3 %vm403_vm2, %v389_v51 }
 0x172   : > { %v3150_v61 = vpop.trf.xlu0 }
 0x173   : > { %v3137_v55 = vpop.trf.xlu2  ;;  %4532 = vst [vmem:[#allocation12_spill] sm:$0xff] %v3150_v61 }
 0x175   : > { %v390_v53 = vpop.trf.xlu1 }
 0x176   : > { %2405 = vmatmul.msk.f32.gmra.mxu2 %vm403_vm2, %v390_v53  ;;  %2422 = vmatmul.msk.f32.gmra.mxu3 %vm403_vm2, %v390_v53 }
 0x17a   : > { %v3156_v0 = vpop.trf.xlu0 }
 0x17b   : > { %v3145_v59 = vpop.trf.xlu2  ;;  %4534 = vst [vmem:[#allocation14_spill] sm:$0xff] %v3156_v0 }
 0x17c   : > { %4531 = vst [vmem:[#allocation11_spill] sm:$0xff] %v3145_v59 }
 0x17d   : > { %v391_v56 = vpop.trf.xlu1 }
 0x17e   : > { %2406 = vmatmul.msk.f32.gmra.mxu2 %vm403_vm2, %v391_v56  ;;  %2423 = vmatmul.msk.f32.gmra.mxu3 %vm403_vm2, %v391_v56 }
 0x182   : > { %v3172_v6 = vpop.trf.xlu0 }
 0x183   : > { %v3154_v63 = vpop.trf.xlu2  ;;  %4536 = vst [vmem:[#allocation16_spill] sm:$0xff] %v3172_v6 }
 0x184   : > { %4533 = vst [vmem:[#allocation13_spill] sm:$0xff] %v3154_v63 }
 0x185   : > { %v392_v58 = vpop.trf.xlu1 }
 0x186   : > { %2407 = vmatmul.msk.f32.gmra.mxu2 %vm403_vm2, %v392_v58  ;;  %2424 = vmatmul.msk.f32.gmra.mxu3 %vm403_vm2, %v392_v58 }
 0x18a   : > { %v3186_v11 = vpop.trf.xlu0 }
 0x18b   : > { %214 = vperm.xlu1 %2598, %v196_v60   ;;  %v3168_v4 = vpop.trf.xlu2  ;;  %4538 = vst [vmem:[#allocation18_spill] sm:$0xff] %v3186_v11 }
 0x18c   : > { %4535 = vst [vmem:[#allocation15_spill] sm:$0xff] %v3168_v4 }
 0x18d   : > { %v393_v62 = vpop.trf.xlu1 }
 0x18e   : > { %2408 = vmatmul.msk.f32.gmra.mxu2 %vm403_vm2, %v393_v62  ;;  %2425 = vmatmul.msk.f32.gmra.mxu3 %vm403_vm2, %v393_v62 }
 0x192   : > { %v3192_v14 = vpop.trf.xlu0 }
 0x193   : > { %v3182_v9 = vpop.trf.xlu2  ;;  %4540 = vst [vmem:[#allocation20_spill] sm:$0xff] %v3192_v14 }
 0x194   : > { %4537 = vst [vmem:[#allocation17_spill] sm:$0xff] %v3182_v9 }
 0x195   : > { %v394_v1 = vpop.trf.xlu1 }
 0x196   : > { %2409 = vmatmul.msk.f32.gmra.mxu2 %vm403_vm2, %v394_v1  ;;  %2426 = vmatmul.msk.f32.gmra.mxu3 %vm403_vm2, %v394_v1 }
 0x19a   : > { %v3198_v17 = vpop.trf.xlu0 }
 0x19b   : > { %234 = vperm.xlu2 %2599, %v200_v3   ;;  %v3190_v13 = vpop.trf.xlu2  ;;  %4542 = vst [vmem:[#allocation22_spill] sm:$0xff] %v3198_v17 }
 0x19c   : > { %4539 = vst [vmem:[#allocation19_spill] sm:$0xff] %v3190_v13 }
 0x19d   : > { %v395_v5 = vpop.trf.xlu1 }
 0x19e   : > { %2410 = vmatmul.msk.f32.gmra.mxu2 %vm403_vm2, %v395_v5  ;;  %2427 = vmatmul.msk.f32.gmra.mxu3 %vm403_vm2, %v395_v5 }
 0x1a2   : > { %v3206_v22 = vpop.trf.xlu0 }
 0x1a3   : > { %v3196_v16 = vpop.trf.xlu2  ;;  %4544 = vst [vmem:[#allocation24_spill] sm:$0xff] %v3206_v22 }
 0x1a4   : > { %239 = vperm.xlu0 %2597, %v201_v8   ;;  %4541 = vst [vmem:[#allocation21_spill] sm:$0xff] %v3196_v16 }
 0x1a5   : > { %v396_v10 = vpop.trf.xlu1 }
 0x1a6   : > { %2411 = vmatmul.msk.f32.gmra.mxu2 %vm403_vm2, %v396_v10  ;;  %2428 = vmatmul.msk.f32.gmra.mxu3 %vm403_vm2, %v396_v10  ;;  %v3262_v10 = vpop.f32.mrf.mxu0 }
 0x1aa   : > { %v3212_v27 = vpop.trf.xlu0 }
 0x1ab   : > { %v3202_v20 = vpop.trf.xlu2  ;;  %4546 = vst [vmem:[#allocation26_spill] sm:$0xff] %v3212_v27 }
 0x1ac   : > { %4543 = vst [vmem:[#allocation23_spill] sm:$0xff] %v3202_v20 }
 0x1ad   : > { %v397_v12 = vpop.trf.xlu1 }
 0x1ae   : > { %2412 = vmatmul.msk.f32.gmra.mxu2 %vm403_vm2, %v397_v12  ;;  %2429 = vmatmul.msk.f32.gmra.mxu3 %vm403_vm2, %v397_v12  ;;  %v3264_v12 = vpop.f32.mrf.mxu1 }
 0x1b2   : > { %v3218_v32 = vpop.trf.xlu0 }
 0x1b3   : > { %v3208_v24 = vpop.trf.xlu2  ;;  %4548 = vst [vmem:[#allocation28_spill] sm:$0xff] %v3218_v32 }
 0x1b4   : > { %4545 = vst [vmem:[#allocation25_spill] sm:$0xff] %v3208_v24 }
 0x1b5   : > { %v398_v15 = vpop.trf.xlu1 }
 0x1b6   : > { %2413 = vmatmul.msk.f32.gmra.mxu2 %vm403_vm2, %v398_v15  ;;  %2430 = vmatmul.msk.f32.gmra.mxu3 %vm403_vm2, %v398_v15 }
 0x1ba   : > { %v3226_v38 = vpop.trf.xlu0 }
 0x1bb   : > { %v3216_v29 = vpop.trf.xlu2  ;;  %4550 = vst [vmem:[#allocation30_spill] sm:$0xff] %v3226_v38 }
 0x1bc   : > { %4547 = vst [vmem:[#allocation27_spill] sm:$0xff] %v3216_v29 }
 0x1bd   : > { %v399_v18 = vpop.trf.xlu1 }
 0x1be   : > { %2414 = vmatmul.msk.f32.gmra.mxu2 %vm403_vm2, %v399_v18  ;;  %2431 = vmatmul.msk.f32.gmra.mxu3 %vm403_vm2, %v399_v18 }
 0x1c0   : > { %1795 = vxpose.xlu1.b32.start.end [1/1] (short) %v1792_v19, 128 }
 0x1c2   : > { %v3234_v42 = vpop.trf.xlu0 }
 0x1c3   : > { %v3220_v33 = vpop.trf.xlu2  ;;  %4552 = vst [vmem:[#allocation32_spill] sm:$0xff] %v3234_v42 }
 0x1c4   : > { %4549 = vst [vmem:[#allocation29_spill] sm:$0xff] %v3220_v33 }
 0x1c5   : > { %v400_v21 = vpop.trf.xlu1 }
 0x1c6   : > { %2415 = vmatmul.msk.f32.gmra.mxu2 %vm403_vm2, %v400_v21  ;;  %2432 = vmatmul.msk.f32.gmra.mxu3 %vm403_vm2, %v400_v21 }
 0x1ca   : > { %v3240_v53 = vpop.trf.xlu0 }
 0x1cb   : > { %v3232_v41 = vpop.trf.xlu2  ;;  %4553 = vst [vmem:[#allocation33_spill] sm:$0xff] %v3240_v53 }
 0x1cc   : > { %4551 = vst [vmem:[#allocation31_spill] sm:$0xff] %v3232_v41 }
 0x1cd   : > { %v401_v25 = vpop.trf.xlu1 }
 0x1ce   : > { %2416 = vmatmul.msk.f32.gmra.mxu2 %vm403_vm2, %v401_v25  ;;  %2433 = vmatmul.msk.f32.gmra.mxu3 %vm403_vm2, %v401_v25  ;;  %v293_v25 = vpop.f32.mrf.mxu0 }
 0x1d2   : > { %v3250_v1 = vpop.trf.xlu0 }
 0x1d3   : > { %4554 = vst [vmem:[#allocation34_spill] sm:$0xff] %v3250_v1 }
 0x1d5   : > { %v402_v28 = vpop.trf.xlu1 }
 0x1d6   : > { %2417 = vmatmul.msk.f32.gmra.mxu2 %vm403_vm2, %v402_v28  ;;  %2434 = vmatmul.msk.f32.gmra.mxu3 %vm403_vm2, %v402_v28  ;;  %v3271_v28 = vadd.f32 %v293_v25, %v3117_v45 }
 0x1da   : > { %v3256_v5 = vpop.trf.xlu0 }
 0x1db   : > { %4555 = vst [vmem:[#allocation35_spill] sm:$0xff] %v3256_v5 }
 0x1e1   : > { %v3222_v34 = vpop.f32.mrf.mxu2  ;;  %v3224_v35 = vpop.f32.mrf.mxu3 }
 0x1e9   : > { %v3228_v39 = vpop.f32.mrf.mxu2  ;;  %v3230_v40 = vpop.f32.mrf.mxu3 }
 0x1f1   : > { %v3236_v43 = vpop.f32.mrf.mxu2  ;;  %v3238_v44 = vpop.f32.mrf.mxu3 }
 0x1f2   : > { %v610_v53 = vmax.f32 %v3224_v35, %v3238_v44 }
 0x1f5   : > { %v235_v47 = vpop.permute.xlu2 %234 }
 0x1f6   : > { %v303_v49 = vadd.f32 %v302_v23, %v235_v47  ;;  %v344_v51 = vadd.f32 %v343_v26, %v235_v47  ;;  %v334_v26 = vpop.f32.mrf.mxu1 }
 0x1f7   : > { %v335_v47 = vadd.f32 %v334_v26, %v3117_v45 }
 0x1f8   : > { %361 = vst [vmem:[#allocation2 + $0x60] sm:$0xff] %v303_v49 }
 0x1f9   : > { %362 = vst [vmem:[#allocation2 + $0x70] sm:$0xff] %v344_v51  ;;  %v3242_v56 = vpop.f32.mrf.mxu2  ;;  %v3244_v58 = vpop.f32.mrf.mxu3 }
 0x1fa   : > { %356 = vst [vmem:[#allocation2 + $0x48] sm:$0xff] %v335_v47  ;;  %v589_v47 = vmax.f32 %v3222_v34, %v3236_v43  ;;  %v590_v42 = vmax.f32 %v3228_v39, %v3242_v56  ;;  %v611_v38 = vmax.f32 %v3230_v40, %v3244_v58 }
 0x201   : > { %v3246_v60 = vpop.f32.mrf.mxu2  ;;  %v3248_v62 = vpop.f32.mrf.mxu3 }
 0x202   : > { %v591_v32 = vmax.f32 %v589_v47, %v3246_v60  ;;  %v612_v27 = vmax.f32 %v610_v53, %v3248_v62 }
 0x209   : > { %v3252_v2 = vpop.f32.mrf.mxu2  ;;  %v3254_v3 = vpop.f32.mrf.mxu3 }
 0x20a   : > { %v592_v22 = vmax.f32 %v590_v42, %v3252_v2  ;;  %v613_v17 = vmax.f32 %v611_v38, %v3254_v3 }
 0x211   : > { %v3258_v7 = vpop.f32.mrf.mxu2  ;;  %v3260_v8 = vpop.f32.mrf.mxu3 }
 0x212   : > { %v593_v6 = vmax.f32 %v591_v32, %v3258_v7  ;;  %v614_v0 = vmax.f32 %v612_v27, %v3260_v8 }
 0x216   : > { %v240_v15 = vpop.permute.xlu0 %239 }
 0x217   : > { %v306_v18 = vadd.f32 %v305_v30, %v240_v15  ;;  %v347_v19 = vadd.f32 %v346_v31, %v240_v15 }
 0x219   : > { %363 = vst [vmem:[#allocation2 + $0x78] sm:$0xff] %v306_v18  ;;  %v3266_v21 = vpop.f32.mrf.mxu2  ;;  %v3268_v23 = vpop.f32.mrf.mxu3 }
 0x21a   : > { %364 = vst [vmem:[#allocation2 + $0x28] sm:$0xff] %v347_v19  ;;  %v594_v61 = vmax.f32 %v592_v22, %v3266_v21  ;;  %v615_v57 = vmax.f32 %v613_v17, %v3268_v23 }
 0x221   : > { %v3274_v49 = vpop.f32.mrf.mxu2  ;;  %v3276_v51 = vpop.f32.mrf.mxu3 }
 0x222   : > { %v595_v54 = vmax.f32 %v593_v6, %v3274_v49  ;;  %v616_v47 = vmax.f32 %v614_v0, %v3276_v51 }
 0x229   : > { %v3278_v30 = vpop.f32.mrf.mxu2  ;;  %v3280_v31 = vpop.f32.mrf.mxu3 }
 0x22a   : > { %v596_v53 = vmax.f32 %v594_v61, %v3278_v30  ;;  %v617_v42 = vmax.f32 %v615_v57, %v3280_v31 }
 0x231   : > { %v3282_v15 = vpop.f32.mrf.mxu2  ;;  %v3284_v18 = vpop.f32.mrf.mxu3 }
 0x232   : > { %v597_v38 = vmax.f32 %v595_v54, %v3282_v15  ;;  %v618_v41 = vmax.f32 %v616_v47, %v3284_v18 }
 0x239   : > { %v3286_v19 = vpop.f32.mrf.mxu2  ;;  %v3288_v5 = vpop.f32.mrf.mxu3 }
 0x23a   : > { %v598_v32 = vmax.f32 %v596_v53, %v3286_v19  ;;  %v619_v27 = vmax.f32 %v617_v42, %v3288_v5 }
 0x241   : > { %v3290_v25 = vpop.f32.mrf.mxu2  ;;  %v3292_v45 = vpop.f32.mrf.mxu3 }
 0x242   : > { %v599_v22 = vmax.f32 %v597_v38, %v3290_v25  ;;  %v620_v17 = vmax.f32 %v618_v41, %v3292_v45 }
 0x249   : > { %v515_v26 = vpop.f32.mrf.mxu2  ;;  %v3294_v1 = vpop.f32.mrf.mxu3 }
 0x24a   : > { %v600_v33 = vmax.f32 %v598_v32, %v515_v26  ;;  %v621_v6 = vmax.f32 %v619_v27, %v3294_v1 }
 0x251   : > { %v518_v14 = vpop.f32.mrf.mxu2  ;;  %v583_v11 = vpop.f32.mrf.mxu3 }
 0x252   : > { %v601_v61 = vmax.f32 %v599_v22, %v518_v14  ;;  %v622_v24 = vmax.f32 %v620_v17, %v583_v11 }
 0x259   : > { %v521_v0 = vpop.f32.mrf.mxu2  ;;  %v586_v29 = vpop.f32.mrf.mxu3 }
 0x25a   : > { %v602_v57 = vmax.f32 %v600_v33, %v521_v0  ;;  %v623_v20 = vmax.f32 %v621_v6, %v586_v29 }
 0x25c   : > { %v603_v54 = vmax.f32 %v601_v61, %v602_v57  ;;  %v624_v16 = vmax.f32 %v622_v24, %v623_v20 }
 0x25e   : > { %v604_v47 = vrot.slane %v603_v54, 4  ;;  %v625_v13 = vrot.slane %v624_v16, 4 }
 0x260   : > { %v605_v53 = vmax.f32 %v603_v54, %v604_v47  ;;  %v626_v9 = vmax.f32 %v624_v16, %v625_v13  ;;  %v215_v54 = vpop.permute.xlu1 %214 }
 0x262   : > { %v606_v42 = vrot.slane %v605_v53, 2  ;;  %v627_v4 = vrot.slane %v626_v9, 2 }
 0x264   : > { %v607_v38 = vmax.f32 %v605_v53, %v606_v42  ;;  %v628_v63 = vmax.f32 %v626_v9, %v627_v4 }
 0x266   : > { %v608_v41 = vrot.slane %v607_v38, 1  ;;  %v629_v32 = vrot.slane %v628_v63, 1 }
 0x268   : > { %v3323_v59 = vmax.f32 %v607_v38, %v608_v41  ;;  %v3325_v27 = vmax.f32 %v628_v63, %v629_v32  ;;  %v3360_v41 = vadd.f32 %v3262_v10, %v215_v54  ;;  %v3373_v10 = vadd.f32 %v3264_v12, %v215_v54 }
 0x26a   : > { %v667_v22 = vsub.f32 %v521_v0, %v3323_v59  ;;  %v668_v33 = vsub.f32 %v586_v29, %v3325_v27  ;;  %v665_v20 = vsub.f32 %v518_v14, %v3323_v59  ;;  %v666_v24 = vsub.f32 %v583_v11, %v3325_v27 }
 0x26b   : > { %v663_v13 = vsub.f32 %v515_v26, %v3323_v59  ;;  %v664_v16 = vsub.f32 %v3294_v1, %v3325_v27  ;;  %v661_v63 = vsub.f32 %v3290_v25, %v3323_v59  ;;  %v662_v0 = vsub.f32 %v3292_v45, %v3325_v27 }
 0x26c   : > { %v729_v4 = vmul.f32 1.442695, %v667_v22  ;;  %v731_v9 = vmul.f32 1.442695, %v668_v33  ;;  %v725_v17 = vmul.f32 1.442695, %v665_v20  ;;  %v659_v11 = vsub.f32 %v3286_v19, %v3323_v59 }
 0x26d   : > { %v727_v6 = vmul.f32 1.442695, %v666_v24  ;;  %v721_v29 = vmul.f32 1.442695, %v663_v13  ;;  %v723_v14 = vmul.f32 1.442695, %v664_v16  ;;  %v660_v1 = vsub.f32 %v3288_v5, %v3325_v27 }
 0x26e   : > { %2600 = vpow2.f32 %v729_v4  ;;  %v717_v26 = vmul.f32 1.442695, %v661_v63  ;;  %v657_v61 = vsub.f32 %v3282_v15, %v3323_v59  ;;  %v719_v25 = vmul.f32 1.442695, %v662_v0 }
 0x26f   : > { %2602 = vpow2.f32 %v731_v9  ;;  %v658_v45 = vsub.f32 %v3284_v18, %v3325_v27  ;;  %v713_v57 = vmul.f32 1.442695, %v659_v11  ;;  %v655_v19 = vsub.f32 %v3278_v30, %v3323_v59 }
 0x270   : > { %2604 = vpow2.f32 %v725_v17  ;;  %v715_v47 = vmul.f32 1.442695, %v660_v1  ;;  %v656_v5 = vsub.f32 %v3280_v31, %v3325_v27  ;;  %v709_v15 = vmul.f32 1.442695, %v657_v61 }
 0x271   : > { %2606 = vpow2.f32 %v727_v6  ;;  %v653_v42 = vsub.f32 %v3274_v49, %v3323_v59  ;;  %v711_v18 = vmul.f32 1.442695, %v658_v45  ;;  %v654_v30 = vsub.f32 %v3276_v51, %v3325_v27 }
 0x272   : > { %2608 = vpow2.f32 %v721_v29  ;;  %v705_v32 = vmul.f32 1.442695, %v655_v19  ;;  %v651_v49 = vsub.f32 %v3266_v21, %v3323_v59  ;;  %v707_v33 = vmul.f32 1.442695, %v656_v5 }
 0x273   : > { %2610 = vpow2.f32 %v723_v14  ;;  %v652_v51 = vsub.f32 %v3268_v23, %v3325_v27  ;;  %v701_v24 = vmul.f32 1.442695, %v653_v42  ;;  %v649_v21 = vsub.f32 %v3258_v7, %v3323_v59 }
 0x274   : > { %v3350_v53 = vpop.eup %2600  ;;  %2612 = vpow2.f32 %v717_v26  ;;  %v703_v16 = vmul.f32 1.442695, %v654_v30  ;;  %v650_v23 = vsub.f32 %v3260_v8, %v3325_v27  ;;  %v697_v4 = vmul.f32 1.442695, %v651_v49 }
 0x275   : > { %v3354_v38 = vpop.eup %2602  ;;  %779 = vmatpush.msrb.mxu0 %v3350_v53  ;;  %2614 = vpow2.f32 %v719_v25  ;;  %v648_v9 = vsub.f32 %v3254_v3, %v3325_v27  ;;  %v699_v7 = vmul.f32 1.442695, %v652_v51  ;;  %v647_v63 = vsub.f32 %v3252_v2, %v3323_v59 }
 0x276   : > { %v3362_v31 = vpop.eup %2604  ;;  %802 = vmatpush.msrb.mxu1 %v3354_v38  ;;  %2616 = vpow2.f32 %v713_v57  ;;  %v693_v8 = vmul.f32 1.442695, %v649_v21  ;;  %v645_v0 = vsub.f32 %v3246_v60, %v3323_v59  ;;  %v695_v3 = vmul.f32 1.442695, %v650_v23 }
 0x277   : > { %v3367_v22 = vpop.eup %2606  ;;  %780 = vmatpush.msrb.mxu0 %v3362_v31  ;;  %2618 = vpow2.f32 %v715_v47  ;;  %v646_v11 = vsub.f32 %v3248_v62, %v3325_v27  ;;  %v691_v2 = vmul.f32 1.442695, %v648_v9  ;;  %v643_v1 = vsub.f32 %v3242_v56, %v3323_v59 }
 0x278   : > { %v3375_v20 = vpop.eup %2608  ;;  %803 = vmatpush.msrb.mxu1 %v3367_v22  ;;  %2620 = vpow2.f32 %v709_v15  ;;  %v689_v60 = vmul.f32 1.442695, %v647_v63  ;;  %v644_v61 = vsub.f32 %v3244_v58, %v3325_v27  ;;  %v685_v62 = vmul.f32 1.442695, %v645_v0 }
 0x279   : > { %v3380_v13 = vpop.eup %2610  ;;  %781 = vmatpush.msrb.mxu0 %v3375_v20  ;;  %2622 = vpow2.f32 %v711_v18  ;;  %v641_v45 = vsub.f32 %v3236_v43, %v3323_v59  ;;  %v687_v56 = vmul.f32 1.442695, %v646_v11  ;;  %v642_v19 = vsub.f32 %v3238_v44, %v3325_v27 }
 0x27a   : > { %v3385_v12 = vpop.eup %2612  ;;  %804 = vmatpush.msrb.mxu1 %v3380_v13  ;;  %2624 = vpow2.f32 %v705_v32  ;;  %v681_v58 = vmul.f32 1.442695, %v643_v1  ;;  %v639_v47 = vsub.f32 %v3228_v39, %v3323_v59  ;;  %v683_v43 = vmul.f32 1.442695, %v644_v61 }
 0x27b   : > { %v3390_v17 = vpop.eup %2614  ;;  %782 = vmatpush.msrb.mxu0 %v3385_v12  ;;  %2626 = vpow2.f32 %v707_v33  ;;  %v640_v15 = vsub.f32 %v3230_v40, %v3325_v27  ;;  %v677_v44 = vmul.f32 1.442695, %v641_v45  ;;  %v637_v18 = vsub.f32 %v3222_v34, %v3323_v59 }
 0x27c   : > { %v3395_v6 = vpop.eup %2616  ;;  %805 = vmatpush.msrb.mxu1 %v3390_v17  ;;  %2628 = vpow2.f32 %v701_v24  ;;  %v679_v39 = vmul.f32 1.442695, %v642_v19  ;;  %v638_v32 = vsub.f32 %v3224_v35, %v3325_v27  ;;  %v673_v40 = vmul.f32 1.442695, %v639_v47 }
 0x27d   : > { %v3400_v29 = vpop.eup %2618  ;;  %783 = vmatpush.msrb.mxu0 %v3395_v6  ;;  %2630 = vpow2.f32 %v703_v16  ;;  %v675_v51 = vmul.f32 1.442695, %v640_v15  ;;  %v669_v34 = vmul.f32 1.442695, %v637_v18 }
 0x27e   : > { %v3405_v14 = vpop.eup %2620  ;;  %806 = vmatpush.msrb.mxu1 %v3400_v29  ;;  %2632 = vpow2.f32 %v697_v4  ;;  %v671_v16 = vmul.f32 1.442695, %v638_v32 }
 0x27f   : > { %v3410_v26 = vpop.eup %2622  ;;  %784 = vmatpush.msrb.mxu0 %v3405_v14  ;;  %2634 = vpow2.f32 %v699_v7 }
 0x280   : > { %v3415_v25 = vpop.eup %2624  ;;  %807 = vmatpush.msrb.mxu1 %v3410_v26  ;;  %2636 = vpow2.f32 %v693_v8 }
 0x281   : > { %v3420_v57 = vpop.eup %2626  ;;  %785 = vmatpush.msrb.mxu0 %v3415_v25  ;;  %2638 = vpow2.f32 %v695_v3 }
 0x282   : > { %v3425_v54 = vpop.eup %2628  ;;  %808 = vmatpush.msrb.mxu1 %v3420_v57  ;;  %2640 = vpow2.f32 %v691_v2 }
 0x283   : > { %v3430_v5 = vpop.eup %2630  ;;  %786 = vmatpush.msrb.mxu0 %v3425_v54  ;;  %2642 = vpow2.f32 %v689_v60 }
 0x284   : > { %v3435_v42 = vpop.eup %2632  ;;  %809 = vmatpush.msrb.mxu1 %v3430_v5  ;;  %2644 = vpow2.f32 %v685_v62 }
 0x285   : > { %v3440_v30 = vpop.eup %2634  ;;  %787 = vmatpush.msrb.mxu0 %v3435_v42  ;;  %2646 = vpow2.f32 %v687_v56 }
 0x286   : > { %v2637_v49 = vpop.eup %2636  ;;  %810 = vmatpush.msrb.mxu1 %v3440_v30  ;;  %2648 = vpow2.f32 %v681_v58 }
 0x287   : > { %v2639_v33 = vpop.eup %2638  ;;  %788 = vmatpush.msrb.mxu0 %v2637_v49  ;;  %2650 = vpow2.f32 %v683_v43 }
 0x288   : > { %v2641_v24 = vpop.eup %2640  ;;  %811 = vmatpush.msrb.mxu1 %v2639_v33  ;;  %2652 = vpow2.f32 %v677_v44 }
 0x289   : > { %v2643_v21 = vpop.eup %2642  ;;  %2654 = vpow2.f32 %v679_v39 }
 0x28a   : > { %v2645_v23 = vpop.eup %2644  ;;  %812 = vmatpush.msrb.mxu1 %v2641_v24  ;;  %789 = vmatpush.msrb.mxu0 %v2643_v21  ;;  %2656 = vpow2.f32 %v673_v40  ;;  %v4566_v40 = vld [vmem:[#allocation31_spill] sm:$0xff] }
 0x28b   : > { %v2647_v35 = vpop.eup %2646  ;;  %2658 = vpow2.f32 %v675_v51 }
 0x28c   : > { %v2649_v4 = vpop.eup %2648  ;;  %790 = vmatpush.msrb.mxu0 %v2645_v23  ;;  %813 = vmatpush.msrb.mxu1 %v2647_v35  ;;  %2660 = vpow2.f32 %v669_v34 }
 0x28d   : > { %v2651_v9 = vpop.eup %2650  ;;  %2662 = vpow2.f32 %v671_v16 }
 0x28e   : > { %v2653_v7 = vpop.eup %2652  ;;  %791 = vmatpush.msrb.mxu0 %v2649_v4  ;;  %814 = vmatpush.msrb.mxu1 %v2651_v9 }
 0x28f   : > { %v2655_v63 = vpop.eup %2654 }
 0x290   : > { %v2657_v8 = vpop.eup %2656  ;;  %792 = vmatpush.msrb.mxu0 %v2653_v7  ;;  %815 = vmatpush.msrb.mxu1 %v2655_v63 }
 0x291   : > { %v2659_v0 = vpop.eup %2658 }
 0x292   : > { %v2661_v3 = vpop.eup %2660  ;;  %793 = vmatpush.msrb.mxu0 %v2657_v8  ;;  %816 = vmatpush.msrb.mxu1 %v2659_v0 }
 0x293   : > { %v2663_v11 = vpop.eup %2662  ;;  %v735_v2 = vadd.f32 %v2661_v3, %v2657_v8 }
 0x294   : > { %794 = vmatpush.msrb.mxu0 %v2661_v3  ;;  %v756_v1 = vadd.f32 %v2663_v11, %v2659_v0  ;;  %817 = vmatpush.msrb.mxu1 %v2663_v11 }
 0x295   : > { %v736_v60 = vadd.f32 %v2653_v7, %v735_v2  ;;  %795 = vmatmul.f32.vlgmr.msrb.gmra.mxu0 %v3360_v41  ;;  %818 = vmatmul.f32.vlgmr.msrb.gmra.mxu1 %v3360_v41 }
 0x296   : > { %v757_v61 = vadd.f32 %v2655_v63, %v756_v1  ;;  %2435 = vmatpush.msk.msra.mxu0 %vm452_vm1, %v3108_v36  ;;  %2452 = vmatpush.msk.msra.mxu1 %vm452_vm1, %v3112_v37 }
 0x297   : > { %v737_v62 = vadd.f32 %v2649_v4, %v736_v60 }
 0x298   : > { %v758_v45 = vadd.f32 %v2651_v9, %v757_v61 }
 0x299   : > { %v738_v56 = vadd.f32 %v2645_v23, %v737_v62 }
 0x29a   : > { %v759_v19 = vadd.f32 %v2647_v35, %v758_v45 }
 0x29b   : > { %v739_v58 = vadd.f32 %v2643_v21, %v738_v56 }
 0x29c   : > { %v760_v47 = vadd.f32 %v2641_v24, %v759_v19 }
 0x29d   : > { %v740_v43 = vadd.f32 %v2637_v49, %v739_v58  ;;  %798 = vmatmul.f32.gmra.mxu0 %v3271_v28  ;;  %821 = vmatmul.f32.gmra.mxu1 %v3271_v28 }
 0x29e   : > { %v761_v15 = vadd.f32 %v2639_v33, %v760_v47 }
 0x29f   : > { %v741_v41 = vadd.f32 %v3435_v42, %v740_v43 }
 0x2a0   : > { %v762_v44 = vadd.f32 %v3440_v30, %v761_v15 }
 0x2a1   : > { %v742_v36 = vadd.f32 %v3425_v54, %v741_v41 }
 0x2a2   : > { %v763_v37 = vadd.f32 %v3430_v5, %v762_v44 }
 0x2a3   : > { %v743_v18 = vadd.f32 %v3415_v25, %v742_v36 }
 0x2a4   : > { %v764_v39 = vadd.f32 %v3420_v57, %v763_v37 }
 0x2a5   : > { %v744_v32 = vadd.f32 %v3405_v14, %v743_v18  ;;  %2436 = vmatmul.msk.f32.vlgmr.msra.gmra.mxu0 %vm403_vm2, %v3119_v46  ;;  %2453 = vmatmul.msk.f32.vlgmr.msra.gmra.mxu1 %vm403_vm2, %v3119_v46 }
 0x2a6   : > { %v765_v28 = vadd.f32 %v3410_v26, %v764_v39  ;;  %v4565_v26 = vld [vmem:[#allocation29_spill] sm:$0xff] }
 0x2a7   : > { %v745_v42 = vadd.f32 %v3395_v6, %v744_v32 }
 0x2a8   : > { %v766_v54 = vadd.f32 %v3400_v29, %v765_v28 }
 0x2a9   : > { %v746_v5 = vadd.f32 %v3385_v12, %v745_v42 }
 0x2aa   : > { %v767_v25 = vadd.f32 %v3390_v17, %v766_v54 }
 0x2ab   : > { %v747_v57 = vadd.f32 %v3375_v20, %v746_v5  ;;  %v4564_v20 = vld [vmem:[#allocation27_spill] sm:$0xff] }
 0x2ac   : > { %v768_v14 = vadd.f32 %v3380_v13, %v767_v25 }
 0x2ad   : > { %2437 = vmatmul.msk.f32.gmra.mxu0 %vm403_vm2, %v3123_v48  ;;  %2454 = vmatmul.msk.f32.gmra.mxu1 %vm403_vm2, %v3123_v48  ;;  %v748_v46 = vadd.f32 %v3362_v31, %v747_v57  ;;  %v4556_v48 = vld [vmem:[#allocation11_spill] sm:$0xff] }
 0x2ae   : > { %v769_v6 = vadd.f32 %v3367_v22, %v768_v14  ;;  %v4562_v31 = vld [vmem:[#allocation23_spill] sm:$0xff]  ;;  %v4563_v22 = vld [vmem:[#allocation25_spill] sm:$0xff] }
 0x2af   : > { %v3479_v29 = vadd.f32 %v3350_v53, %v748_v46  ;;  %v4557_v53 = vld [vmem:[#allocation13_spill] sm:$0xff] }
 0x2b0   : > { %v3482_v12 = vadd.f32 %v3354_v38, %v769_v6  ;;  %v4561_v38 = vld [vmem:[#allocation21_spill] sm:$0xff] }
 0x2b5   : > { %2438 = vmatmul.msk.f32.gmra.mxu0 %vm403_vm2, %v3127_v50  ;;  %2455 = vmatmul.msk.f32.gmra.mxu1 %vm403_vm2, %v3127_v50  ;;  %v4558_v50 = vld [vmem:[#allocation15_spill] sm:$0xff] }
 0x2bd   : > { %2439 = vmatmul.msk.f32.gmra.mxu0 %vm403_vm2, %v3131_v52  ;;  %2456 = vmatmul.msk.f32.gmra.mxu1 %vm403_vm2, %v3131_v52  ;;  %v4559_v52 = vld [vmem:[#allocation17_spill] sm:$0xff] }
 0x2c5   : > { %2440 = vmatmul.msk.f32.gmra.mxu0 %vm403_vm2, %v3137_v55  ;;  %2457 = vmatmul.msk.f32.gmra.mxu1 %vm403_vm2, %v3137_v55  ;;  %v4560_v55 = vld [vmem:[#allocation19_spill] sm:$0xff] }
 0x2cd   : > { %2441 = vmatmul.msk.f32.gmra.mxu0 %vm403_vm2, %v4556_v48  ;;  %2458 = vmatmul.msk.f32.gmra.mxu1 %vm403_vm2, %v4556_v48 }
 0x2d5   : > { %2442 = vmatmul.msk.f32.gmra.mxu0 %vm403_vm2, %v4557_v53  ;;  %2459 = vmatmul.msk.f32.gmra.mxu1 %vm403_vm2, %v4557_v53 }
 0x2dd   : > { %2443 = vmatmul.msk.f32.gmra.mxu0 %vm403_vm2, %v4558_v50  ;;  %2460 = vmatmul.msk.f32.gmra.mxu1 %vm403_vm2, %v4558_v50 }
 0x2e5   : > { %2444 = vmatmul.msk.f32.gmra.mxu0 %vm403_vm2, %v4559_v52  ;;  %2461 = vmatmul.msk.f32.gmra.mxu1 %vm403_vm2, %v4559_v52 }
 0x2ed   : > { %2445 = vmatmul.msk.f32.gmra.mxu0 %vm403_vm2, %v4560_v55  ;;  %2462 = vmatmul.msk.f32.gmra.mxu1 %vm403_vm2, %v4560_v55 }
 0x2f5   : > { %2446 = vmatmul.msk.f32.gmra.mxu0 %vm403_vm2, %v4561_v38  ;;  %2463 = vmatmul.msk.f32.gmra.mxu1 %vm403_vm2, %v4561_v38 }
 0x2fd   : > { %2447 = vmatmul.msk.f32.gmra.mxu0 %vm403_vm2, %v4562_v31  ;;  %2464 = vmatmul.msk.f32.gmra.mxu1 %vm403_vm2, %v4562_v31 }
 0x305   : > { %2448 = vmatmul.msk.f32.gmra.mxu0 %vm403_vm2, %v4563_v22  ;;  %2465 = vmatmul.msk.f32.gmra.mxu1 %vm403_vm2, %v4563_v22 }
 0x30d   : > { %2449 = vmatmul.msk.f32.gmra.mxu0 %vm403_vm2, %v4564_v20  ;;  %2466 = vmatmul.msk.f32.gmra.mxu1 %vm403_vm2, %v4564_v20 }
 0x312   : > { %v3532_v13 = vpop.f32.mrf.mxu0  ;;  %v3534_v17 = vpop.f32.mrf.mxu1 }
 0x315   : > { %2450 = vmatmul.msk.f32.gmra.mxu0 %vm403_vm2, %v4565_v26  ;;  %2467 = vmatmul.msk.f32.gmra.mxu1 %vm403_vm2, %v4565_v26 }
 0x31a   : > { %v3540_v30 = vpop.f32.mrf.mxu0  ;;  %v3542_v49 = vpop.f32.mrf.mxu1 }
 0x31d   : > { %2451 = vmatmul.msk.f32.gmra.mxu0 %vm403_vm2, %v4566_v40  ;;  %2468 = vmatmul.msk.f32.gmra.mxu1 %vm403_vm2, %v4566_v40 }
 0x322   : > { %v3548_v33 = vpop.f32.mrf.mxu0  ;;  %v3550_v51 = vpop.f32.mrf.mxu1 }
 0x32a   : > { %v3552_v24 = vpop.f32.mrf.mxu0  ;;  %v3554_v34 = vpop.f32.mrf.mxu1 }
 0x332   : > { %v3556_v21 = vpop.f32.mrf.mxu0  ;;  %v3558_v16 = vpop.f32.mrf.mxu1 }
 0x333   : > { %v1043_v41 = vmax.f32 %v3548_v33, %v3556_v21  ;;  %v1064_v44 = vmax.f32 %v3550_v51, %v3558_v16 }
 0x33a   : > { %v3560_v23 = vpop.f32.mrf.mxu0  ;;  %v3562_v35 = vpop.f32.mrf.mxu1 }
 0x33b   : > { %v1044_v36 = vmax.f32 %v3552_v24, %v3560_v23  ;;  %v1065_v37 = vmax.f32 %v3554_v34, %v3562_v35 }
 0x342   : > { %v3564_v4 = vpop.f32.mrf.mxu0  ;;  %v3566_v9 = vpop.f32.mrf.mxu1 }
 0x343   : > { %v1045_v18 = vmax.f32 %v1043_v41, %v3564_v4  ;;  %v1066_v39 = vmax.f32 %v1064_v44, %v3566_v9 }
 0x34a   : > { %v3568_v7 = vpop.f32.mrf.mxu0  ;;  %v3570_v63 = vpop.f32.mrf.mxu1 }
 0x34b   : > { %v1046_v32 = vmax.f32 %v1044_v36, %v3568_v7  ;;  %v1067_v28 = vmax.f32 %v1065_v37, %v3570_v63 }
 0x352   : > { %v3572_v8 = vpop.f32.mrf.mxu0  ;;  %v3574_v0 = vpop.f32.mrf.mxu1 }
 0x353   : > { %v1047_v5 = vmax.f32 %v1045_v18, %v3572_v8  ;;  %v1068_v25 = vmax.f32 %v1066_v39, %v3574_v0 }
 0x35a   : > { %v3576_v3 = vpop.f32.mrf.mxu0  ;;  %v3578_v11 = vpop.f32.mrf.mxu1 }
 0x35b   : > { %v1048_v57 = vmax.f32 %v1046_v32, %v3576_v3  ;;  %v1069_v14 = vmax.f32 %v1067_v28, %v3578_v11  ;;  %v750_v28 = vrot.slane %v3479_v29, 4 }
 0x362   : > { %v3580_v2 = vpop.f32.mrf.mxu0  ;;  %v3582_v1 = vpop.f32.mrf.mxu1 }
 0x363   : > { %v1049_v46 = vmax.f32 %v1047_v5, %v3580_v2  ;;  %v1070_v6 = vmax.f32 %v1068_v25, %v3582_v1 }
 0x36a   : > { %v3584_v60 = vpop.f32.mrf.mxu0  ;;  %v3586_v61 = vpop.f32.mrf.mxu1 }
 0x36b   : > { %v1050_v48 = vmax.f32 %v1048_v57, %v3584_v60  ;;  %v1071_v53 = vmax.f32 %v1069_v14, %v3586_v61  ;;  %v751_v14 = vadd.f32 %v750_v28, %v3479_v29 }
 0x372   : > { %v3588_v62 = vpop.f32.mrf.mxu0  ;;  %v3590_v45 = vpop.f32.mrf.mxu1 }
 0x373   : > { %v1051_v50 = vmax.f32 %v1049_v46, %v3588_v62  ;;  %v1072_v52 = vmax.f32 %v1070_v6, %v3590_v45  ;;  %v631_v46 = vsub.f32 -inf, %v3323_v59 }
 0x37a   : > { %v3592_v56 = vpop.f32.mrf.mxu0  ;;  %v3594_v19 = vpop.f32.mrf.mxu1 }
 0x37b   : > { %v1052_v55 = vmax.f32 %v1050_v48, %v3592_v56  ;;  %v1073_v38 = vmax.f32 %v1071_v53, %v3594_v19 }
 0x382   : > { %v3596_v58 = vpop.f32.mrf.mxu0  ;;  %v3598_v47 = vpop.f32.mrf.mxu1 }
 0x383   : > { %v1053_v31 = vmax.f32 %v1051_v50, %v3596_v58  ;;  %v1074_v22 = vmax.f32 %v1072_v52, %v3598_v47  ;;  %v752_v50 = vrot.slane %v751_v14, 2  ;;  %v633_v52 = vmul.f32 1.442695, %v631_v46 }
 0x385   : > { %2664 = vpow2.f32 %v633_v52 }
 0x38a   : > { %v3600_v43 = vpop.f32.mrf.mxu0  ;;  %v3602_v15 = vpop.f32.mrf.mxu1 }
 0x38b   : > { %v1054_v20 = vmax.f32 %v1052_v55, %v3600_v43  ;;  %v1075_v26 = vmax.f32 %v1073_v38, %v3602_v15 }
 0x392   : > { %v3616_v42 = vpop.f32.mrf.mxu0  ;;  %v3618_v54 = vpop.f32.mrf.mxu1 }
 0x393   : > { %v1055_v44 = vmax.f32 %v1053_v31, %v3616_v42  ;;  %v1076_v36 = vmax.f32 %v1074_v22, %v3618_v54  ;;  %v753_v22 = vadd.f32 %v752_v50, %v751_v14 }
 0x39a   : > { %v3636_v40 = vpop.f32.mrf.mxu0  ;;  %v3638_v41 = vpop.f32.mrf.mxu1 }
 0x39b   : > { %v1056_v37 = vmax.f32 %v1054_v20, %v3636_v40  ;;  %v1077_v18 = vmax.f32 %v1075_v26, %v3638_v41 }
 0x39d   : > { %v1057_v39 = vmax.f32 %v1055_v44, %v1056_v37  ;;  %v1078_v32 = vmax.f32 %v1076_v36, %v1077_v18  ;;  %v632_v44 = vsub.f32 -inf, %v3325_v27  ;;  %v754_v37 = vrot.slane %v753_v22, 1 }
 0x39f   : > { %v1058_v5 = vrot.slane %v1057_v39, 4  ;;  %v1079_v25 = vrot.slane %v1078_v32, 4  ;;  %v635_v14 = vmul.f32 1.442695, %v632_v44  ;;  %v755_v46 = vadd.f32 %v754_v37, %v753_v22 }
 0x3a1   : > { %v1059_v57 = vmax.f32 %v1057_v39, %v1058_v5  ;;  %v1080_v48 = vmax.f32 %v1078_v32, %v1079_v25  ;;  %v771_v32 = vrot.slane %v3482_v12, 4 }
 0x3a3   : > { %v1060_v6 = vrot.slane %v1059_v57, 2  ;;  %v1081_v38 = vrot.slane %v1080_v48, 2 }
 0x3a5   : > { %v1061_v53 = vmax.f32 %v1059_v57, %v1060_v6  ;;  %v1082_v26 = vmax.f32 %v1080_v48, %v1081_v38  ;;  %v2665_v57 = vpop.eup %2664  ;;  %v772_v48 = vadd.f32 %v771_v32, %v3482_v12 }
 0x3a6   : > { %v3669_v50 = vmul.f32 0.0, %v2665_v57 }
 0x3a7   : > { %v1062_v55 = vrot.slane %v1061_v53, 1  ;;  %v1083_v5 = vrot.slane %v1082_v26, 1  ;;  %v773_v22 = vrot.slane %v772_v48, 2 }
 0x3a8   : > { %v777_v38 = vadd.f32 %v755_v46, %v3669_v50 }
 0x3a9   : > { %v1063_v31 = vmax.f32 %v1061_v53, %v1062_v55 }
 0x3ab   : > { %v3648_v20 = vmax.f32 %v3323_v59, %v1063_v31 }
 0x3ad   : > { %v1087_v29 = vsub.f32 %v3323_v59, %v3648_v20  ;;  %v1093_v36 = vsub.f32 %v3548_v33, %v3648_v20  ;;  %v1095_v18 = vsub.f32 %v3552_v24, %v3648_v20  ;;  %v1097_v39 = vsub.f32 %v3556_v21, %v3648_v20 }
 0x3ae   : > { %v1099_v25 = vsub.f32 %v3560_v23, %v3648_v20  ;;  %v1101_v59 = vsub.f32 %v3564_v4, %v3648_v20  ;;  %v1103_v24 = vsub.f32 %v3568_v7, %v3648_v20  ;;  %v1105_v53 = vsub.f32 %v3572_v8, %v3648_v20 }
 0x3af   : > { %v1089_v28 = vmul.f32 1.442695, %v1087_v29  ;;  %v1125_v33 = vmul.f32 1.442695, %v1093_v36  ;;  %v1129_v6 = vmul.f32 1.442695, %v1095_v18  ;;  %v1084_v23 = vmax.f32 %v1082_v26, %v1083_v5 }
 0x3b0   : > { %v1133_v21 = vmul.f32 1.442695, %v1097_v39  ;;  %v1107_v52 = vsub.f32 %v3576_v3, %v3648_v20  ;;  %v1137_v4 = vmul.f32 1.442695, %v1099_v25  ;;  %v1109_v7 = vsub.f32 %v3580_v2, %v3648_v20 }
 0x3b1   : > { %2666 = vpow2.f32 %v1089_v28  ;;  %v1141_v55 = vmul.f32 1.442695, %v1101_v59  ;;  %v1111_v12 = vsub.f32 %v3584_v60, %v3648_v20  ;;  %v1145_v8 = vmul.f32 1.442695, %v1103_v24 }
 0x3b2   : > { %2668 = vpow2.f32 %v1125_v33  ;;  %v1113_v3 = vsub.f32 %v3588_v62, %v3648_v20  ;;  %v1149_v26 = vmul.f32 1.442695, %v1105_v53  ;;  %v3683_v44 = vmax.f32 %v3325_v27, %v1084_v23 }
 0x3b3   : > { %2670 = vpow2.f32 %v1129_v6  ;;  %v1115_v2 = vsub.f32 %v3592_v56, %v3648_v20  ;;  %v1153_v29 = vmul.f32 1.442695, %v1107_v52  ;;  %v1121_v37 = vsub.f32 %v3616_v42, %v3648_v20 }
 0x3b4   : > { %2672 = vpow2.f32 %v635_v14  ;;  %v1157_v18 = vmul.f32 1.442695, %v1109_v7  ;;  %v1123_v39 = vsub.f32 %v3636_v40, %v3648_v20  ;;  %v1161_v32 = vmul.f32 1.442695, %v1111_v12 }
 0x3b5   : > { %2674 = vpow2.f32 %v1133_v21  ;;  %v1165_v28 = vmul.f32 1.442695, %v1113_v3  ;;  %v1088_v25 = vsub.f32 %v3325_v27, %v3683_v44  ;;  %v774_v42 = vadd.f32 %v773_v22, %v772_v48 }
 0x3b6   : > { %2676 = vpow2.f32 %v1137_v4  ;;  %v1169_v14 = vmul.f32 1.442695, %v1115_v2  ;;  %v1094_v59 = vsub.f32 %v3550_v51, %v3683_v44  ;;  %v1181_v40 = vmul.f32 1.442695, %v1121_v37 }
 0x3b7   : > { %v3678_v31 = vpop.eup %2666  ;;  %2678 = vpow2.f32 %v1141_v55  ;;  %v1096_v46 = vsub.f32 %v3554_v34, %v3683_v44  ;;  %v1119_v27 = vsub.f32 %v3600_v43, %v3648_v20  ;;  %v1185_v6 = vmul.f32 1.442695, %v1123_v39 }
 0x3b8   : > { %v3688_v36 = vmul.f32 %v3678_v31, %v777_v38  ;;  %v3690_v60 = vpop.eup %2668  ;;  %2680 = vpow2.f32 %v1145_v8  ;;  %v1091_v51 = vmul.f32 1.442695, %v1088_v25  ;;  %v1098_v53 = vsub.f32 %v3558_v16, %v3683_v44 }
 0x3b9   : > { %v3694_v62 = vpop.eup %2670  ;;  %2682 = vpow2.f32 %v1149_v26  ;;  %v775_v52 = vrot.slane %v774_v42, 1  ;;  %v1117_v34 = vsub.f32 %v3596_v58, %v3648_v20  ;;  %v1127_v4 = vmul.f32 1.442695, %v1094_v59 }
 0x3ba   : > { %v2673_v56 = vpop.eup %2672  ;;  %v1191_v5 = vadd.f32 %v3694_v62, %v3690_v60  ;;  %2684 = vpow2.f32 %v1153_v29  ;;  %v1100_v55 = vsub.f32 %v3562_v35, %v3683_v44  ;;  %v1131_v38 = vmul.f32 1.442695, %v1096_v46 }
 0x3bb   : > { %v3702_v57 = vpop.eup %2674  ;;  %2686 = vpow2.f32 %v1157_v18  ;;  %v1177_v16 = vmul.f32 1.442695, %v1119_v27  ;;  %v1102_v58 = vsub.f32 %v3566_v9, %v3683_v44  ;;  %v1135_v20 = vmul.f32 1.442695, %v1098_v53 }
 0x3bc   : > { %v1192_v33 = vadd.f32 %v3702_v57, %v1191_v5  ;;  %v3709_v24 = vpop.eup %2676  ;;  %2688 = vpow2.f32 %v1161_v32  ;;  %v776_v26 = vadd.f32 %v775_v52, %v774_v42  ;;  %v1173_v2 = vmul.f32 1.442695, %v1117_v34 }
 0x3bd   : > { %v3713_v21 = vpop.eup %2678  ;;  %2690 = vpow2.f32 %v1165_v28  ;;  %v1104_v37 = vsub.f32 %v3570_v63, %v3683_v44  ;;  %v1139_v18 = vmul.f32 1.442695, %v1100_v55  ;;  %v3741_v32 = vmul.f32 0.0, %v2673_v56 }
 0x3be   : > { %v1193_v48 = vadd.f32 %v3709_v24, %v1192_v33  ;;  %v3718_v23 = vpop.eup %2680  ;;  %2692 = vpow2.f32 %v1169_v14  ;;  %v1106_v5 = vsub.f32 %v3574_v0, %v3683_v44  ;;  %v1143_v25 = vmul.f32 1.442695, %v1102_v58 }
 0x3bf   : > { %v3722_v43 = vpop.eup %2682  ;;  %2694 = vpow2.f32 %v1181_v40  ;;  %v778_v14 = vadd.f32 %v776_v26, %v3741_v32  ;;  %v1108_v59 = vsub.f32 %v3578_v11, %v3683_v44  ;;  %v1147_v40 = vmul.f32 1.442695, %v1104_v37 }
 0x3c0   : > { %v1194_v7 = vadd.f32 %v3713_v21, %v1193_v48  ;;  %v3727_v12 = vpop.eup %2684  ;;  %2696 = vpow2.f32 %v1185_v6  ;;  %v1110_v0 = vsub.f32 %v3582_v1, %v3683_v44  ;;  %v1124_v48 = vsub.f32 %v3638_v41, %v3683_v44 }
 0x3c1   : > { %v3729_v8 = vpop.eup %2686  ;;  %2698 = vpow2.f32 %v1091_v51  ;;  %v1151_v11 = vmul.f32 1.442695, %v1106_v5  ;;  %v1112_v53 = vsub.f32 %v3586_v61, %v3683_v44  ;;  %v1155_v41 = vmul.f32 1.442695, %v1108_v59 }
 0x3c2   : > { %v1195_v22 = vadd.f32 %v3718_v23, %v1194_v7  ;;  %v3734_v3 = vpop.eup %2688  ;;  %2700 = vpow2.f32 %v1127_v4  ;;  %v1122_v4 = vsub.f32 %v3618_v54, %v3683_v44  ;;  %v1114_v55 = vsub.f32 %v3590_v45, %v3683_v44 }
 0x3c3   : > { %v3736_v35 = vpop.eup %2690  ;;  %2702 = vpow2.f32 %v1131_v38  ;;  %v1159_v38 = vmul.f32 1.442695, %v1110_v0  ;;  %v1120_v58 = vsub.f32 %v3602_v15, %v3683_v44  ;;  %v1116_v54 = vsub.f32 %v3594_v19, %v3683_v44 }
 0x3c4   : > { %v1196_v29 = vadd.f32 %v3722_v43, %v1195_v22  ;;  %v2693_v39 = vpop.eup %2692  ;;  %2704 = vpow2.f32 %v1177_v16  ;;  %v1163_v26 = vmul.f32 1.442695, %v1112_v53  ;;  %v1118_v37 = vsub.f32 %v3598_v47, %v3683_v44 }
 0x3c5   : > { %v3743_v9 = vpop.eup %2694  ;;  %2706 = vpow2.f32 %v1135_v20  ;;  %v1187_v20 = vmul.f32 1.442695, %v1124_v48  ;;  %v1167_v15 = vmul.f32 1.442695, %v1114_v55  ;;  %v1179_v19 = vmul.f32 1.442695, %v1120_v58 }
 0x3c6   : > { %v1197_v28 = vadd.f32 %v3727_v12, %v1196_v29  ;;  %v3748_v42 = vpop.eup %2696  ;;  %2708 = vpow2.f32 %v1173_v2  ;;  %v1175_v44 = vmul.f32 1.442695, %v1118_v37  ;;  %v4574_v37 = vld [vmem:[#allocation22_spill] sm:$0xff] }
 0x3c7   : > { %v3751_v63 = vpop.eup %2698  ;;  %2710 = vpow2.f32 %v1139_v18  ;;  %1239 = vmatpush.msra.mxu2 %v3748_v42  ;;  %v1183_v18 = vmul.f32 1.442695, %v1122_v4 }
 0x3c8   : > { %v1198_v56 = vadd.f32 %v3729_v8, %v1197_v28  ;;  %v3757_v33 = vpop.eup %2700  ;;  %v3762_v46 = vmul.f32 %v3751_v63, %v778_v14  ;;  %2712 = vpow2.f32 %v1143_v25  ;;  %v1171_v14 = vmul.f32 1.442695, %v1116_v54 }
 0x3c9   : > { %v3764_v27 = vpop.eup %2702  ;;  %1240 = vmatpush.msra.mxu2 %v3743_v9  ;;  %2714 = vpow2.f32 %v1147_v40 }
 0x3ca   : > { %v1199_v6 = vadd.f32 %v3734_v3, %v1198_v56  ;;  %v2705_v51 = vpop.eup %2704  ;;  %v1212_v1 = vadd.f32 %v3764_v27, %v3757_v33  ;;  %2716 = vpow2.f32 %v1151_v11 }
 0x3cb   : > { %v3774_v52 = vpop.eup %2706  ;;  %1241 = vmatpush.msra.mxu2 %v2705_v51  ;;  %2718 = vpow2.f32 %v1155_v41 }
 0x3cc   : > { %v1200_v34 = vadd.f32 %v3736_v35, %v1199_v6  ;;  %v2709_v7 = vpop.eup %2708  ;;  %v1213_v61 = vadd.f32 %v3774_v52, %v1212_v1  ;;  %2720 = vpow2.f32 %v1159_v38 }
 0x3cd   : > { %v3782_v16 = vpop.eup %2710  ;;  %1242 = vmatpush.msra.mxu2 %v2709_v7  ;;  %2722 = vpow2.f32 %v1187_v20 }
 0x3ce   : > { %v1201_v22 = vadd.f32 %v2693_v39, %v1200_v34  ;;  %v1214_v2 = vadd.f32 %v3782_v16, %v1213_v61  ;;  %v3789_v29 = vpop.eup %2712  ;;  %2724 = vpow2.f32 %v1163_v26 }
 0x3cf   : > { %1243 = vmatpush.msra.mxu2 %v2693_v39  ;;  %v3794_v5 = vpop.eup %2714  ;;  %2726 = vpow2.f32 %v1183_v18  ;;  %v4575_v18 = vld [vmem:[#allocation24_spill] sm:$0xff] }
 0x3d0   : > { %v1202_v45 = vadd.f32 %v2709_v7, %v1201_v22  ;;  %v1215_v28 = vadd.f32 %v3789_v29, %v1214_v2  ;;  %v2717_v59 = vpop.eup %2716  ;;  %2728 = vpow2.f32 %v1167_v15  ;;  %v4576_v15 = vld [vmem:[#allocation26_spill] sm:$0xff] }
 0x3d1   : > { %1244 = vmatpush.msra.mxu2 %v3736_v35  ;;  %v2719_v40 = vpop.eup %2718  ;;  %2730 = vpow2.f32 %v1179_v19  ;;  %v4579_v19 = vld [vmem:[#allocation32_spill] sm:$0xff] }
 0x3d2   : > { %v1203_v25 = vadd.f32 %v2705_v51, %v1202_v45  ;;  %v1216_v56 = vadd.f32 %v3794_v5, %v1215_v28  ;;  %v2721_v35 = vpop.eup %2720  ;;  %2732 = vpow2.f32 %v1171_v14  ;;  %v4567_v45 = vld [vmem:[#allocation9_spill] sm:$0xff]  ;;  %v4577_v28 = vld [vmem:[#allocation28_spill] sm:$0xff] }
 0x3d3   : > { %1245 = vmatpush.msra.mxu2 %v3734_v3  ;;  %v2723_v48 = vpop.eup %2722  ;;  %2734 = vpow2.f32 %v1175_v44 }
 0x3d4   : > { %v1204_v47 = vadd.f32 %v3743_v9, %v1203_v25  ;;  %v1217_v39 = vadd.f32 %v2717_v59, %v1216_v56  ;;  %v2725_v9 = vpop.eup %2724  ;;  %1262 = vmatpush.msra.mxu3 %v2723_v48 }
 0x3d5   : > { %1246 = vmatpush.msra.mxu2 %v3729_v8  ;;  %v2727_v3 = vpop.eup %2726 }
 0x3d6   : > { %v1205_v0 = vadd.f32 %v3748_v42, %v1204_v47  ;;  %v1218_v6 = vadd.f32 %v2719_v40, %v1217_v39  ;;  %v2729_v1 = vpop.eup %2728  ;;  %1263 = vmatpush.msra.mxu3 %v2727_v3 }
 0x3d7   : > { %1247 = vmatpush.msra.mxu2 %v3727_v12  ;;  %v2731_v34 = vpop.eup %2730 }
 0x3d8   : > { %v1206_v11 = vrot.slane %v1205_v0, 4  ;;  %v1219_v51 = vadd.f32 %v2721_v35, %v1218_v6  ;;  %v2733_v4 = vpop.eup %2732  ;;  %1264 = vmatpush.msra.mxu3 %v2731_v34 }
 0x3d9   : > { %1248 = vmatpush.msra.mxu2 %v3722_v43  ;;  %v2735_v7 = vpop.eup %2734 }
 0x3da   : > { %v1207_v53 = vadd.f32 %v1206_v11, %v1205_v0  ;;  %v1220_v42 = vadd.f32 %v2725_v9, %v1219_v51  ;;  %1265 = vmatpush.msra.mxu3 %v2735_v7  ;;  %v825_v0 = vadd.f32 %v3532_v13, %v3669_v50 }
 0x3db   : > { %1249 = vmatpush.msra.mxu2 %v3718_v23 }
 0x3dc   : > { %v1208_v8 = vrot.slane %v1207_v53, 2  ;;  %v1221_v41 = vadd.f32 %v2729_v1, %v1220_v42  ;;  %1266 = vmatpush.msra.mxu3 %v2733_v4 }
 0x3dd   : > { %1250 = vmatpush.msra.mxu2 %v3713_v21 }
 0x3de   : > { %v1209_v55 = vadd.f32 %v1208_v8, %v1207_v53  ;;  %v1222_v12 = vadd.f32 %v2733_v4, %v1221_v41  ;;  %1267 = vmatpush.msra.mxu3 %v2729_v1  ;;  %v1321_v1 = vstv %s365_s6  ;;  %v827_v8 = vadd.f32 %v3540_v30, %v3669_v50  ;;  %v4582_v41 = vld [vmem:[#allocation35_spill] sm:$0xff] }
 0x3df   : > { %1251 = vmatpush.msra.mxu2 %v3709_v24  ;;  %v3814_v24 = vld [vmem:[#allocation2 + $0x40] sm:$0xf] }
 0x3e0   : > { %v1210_v38 = vrot.slane %v1209_v55, 1  ;;  %v1223_v43 = vadd.f32 %v2735_v7, %v1222_v12  ;;  %1268 = vmatpush.msra.mxu3 %v2725_v9  ;;  %v2880_v7 = vld [vmem:[%s3059_s12] sm:$0xff]  ;;  %v1237_v12 = vmul.f32 %v3678_v31, %v827_v8 }
 0x3e1   : > { %1252 = vmatpush.msra.mxu2 %v3702_v57 }
 0x3e2   : > { %v1211_v61 = vadd.f32 %v1210_v38, %v1209_v55  ;;  %v1224_v22 = vadd.f32 %v2731_v34, %v1223_v43  ;;  %1269 = vmatpush.msra.mxu3 %v2721_v35  ;;  %v4581_v35 = vld [vmem:[#allocation34_spill] sm:$0xff] }
 0x3e3   : > { %1253 = vmatpush.msra.mxu2 %v3694_v62  ;;  %v832_v62 = vld [vmem:[#allocation2 + $0x48] sm:$0xff] }
 0x3e4   : > { %v3809_v23 = vadd.f32 %v1211_v61, %v3688_v36  ;;  %v1225_v58 = vadd.f32 %v2727_v3, %v1224_v22  ;;  %1270 = vmatpush.msra.mxu3 %v2719_v40 }
 0x3e5   : > { %1254 = vmatpush.msra.mxu2 %v3690_v60 }
 0x3e6   : > { %v1226_v21 = vadd.f32 %v2723_v48, %v1225_v58  ;;  %1255 = vmatmul.f32.vlgmr.msra.gmra.mxu2 %v3373_v10  ;;  %1271 = vmatpush.msra.mxu3 %v2717_v59  ;;  %2736 = vrcp.f32 %v3809_v23  ;;  %v4580_v59 = vld [vmem:[#allocation33_spill] sm:$0xff]  ;;  %v1300_v39 = vand.u32 2147483648, %v3809_v23  ;;  %vm1294_vm4 = vweird.f32 %v3809_v23 }
 0x3e7   : > { %2470 = vmatpush.msk.msrb.mxu2 %vm452_vm1, %v3814_v24  ;;  %v1298_v6 = vand.u32 2147483647, %v3809_v23  ;;  %v1235_v48 = vmul.f32 %v3678_v31, %v825_v0  ;;  %v826_v58 = vadd.f32 %v3534_v17, %v3741_v32 }
 0x3e8   : > { %v1227_v57 = vrot.slane %v1226_v21, 4  ;;  %1272 = vmatpush.msra.mxu3 %v3794_v5  ;;  %v4578_v5 = vld [vmem:[#allocation30_spill] sm:$0xff]  ;;  %v1301_v51 = vor.u32 1.1754944e-38, %v1300_v39 }
 0x3e9   : > { %vm1299_vm6 = vcmp.eq.f32.partialorder %v1298_v6, 8.507059e+37 }
 0x3ea   : > { %v1228_v20 = vadd.f32 %v1227_v57, %v1226_v21  ;;  %1273 = vmatpush.msra.mxu3 %v3789_v29  ;;  %v3830_v29 = vld [vmem:[#allocation2 + $0x20] sm:$0xf]  ;;  %v2881_v21 = vld [vmem:[%s3059_s12 + $0x10] sm:$0xff] }
 0x3ec   : > { %v1229_v36 = vrot.slane %v1228_v20, 2  ;;  %1274 = vmatpush.msra.mxu3 %v3782_v16  ;;  %v4568_v16 = vld [vmem:[#allocation10_spill] sm:$0xff]  ;;  %v2737_v25 = vpop.eup %2736 }
 0x3ed   : > { %v1290_v14 = vmul.f32 %v2737_v25, %v3809_v23  ;;  %vm1295_vm3 = vweird.f32 %v2737_v25 }
 0x3ee   : > { %v1230_v54 = vadd.f32 %v1229_v36, %v1228_v20  ;;  %1258 = vmatmul.f32.gmra.mxu2 %v832_v62  ;;  %1275 = vmatpush.msra.mxu3 %v3774_v52  ;;  %v4573_v52 = vld [vmem:[#allocation20_spill] sm:$0xff]  ;;  %vm1296_vm5 = vmor %vm1294_vm4, %vm1295_vm3  ;;  %v1236_v20 = vmul.f32 %v3751_v63, %v826_v58 }
 0x3ef   : > { %v1291_v56 = vsub.f32 1.0, %v1290_v14 }
 0x3f0   : > { %v1231_v60 = vrot.slane %v1230_v54, 1  ;;  %1276 = vmatpush.msra.mxu3 %v3764_v27  ;;  %v4572_v27 = vld [vmem:[#allocation18_spill] sm:$0xff] }
 0x3f1   : > { %v1292_v47 = vmul.f32 %v2737_v25, %v1291_v56 }
 0x3f2   : > { %v1232_v26 = vadd.f32 %v1231_v60, %v1230_v54  ;;  %1277 = vmatpush.msra.mxu3 %v3757_v33  ;;  %v4570_v33 = vld [vmem:[#allocation14_spill] sm:$0xff] }
 0x3f3   : > { %1278 = vmatmul.f32.vlgmr.msra.gmra.mxu3 %v3373_v10  ;;  %v4571_v10 = vld [vmem:[#allocation16_spill] sm:$0xff]  ;;  %v1293_v44 = vadd.f32 %v2737_v25, %v1292_v47 }
 0x3f4   : > { %v3823_v2 = vadd.f32 %v1232_v26, %v3762_v46  ;;  %2487 = vmatpush.msk.msrb.mxu3 %vm452_vm1, %v3830_v29  ;;  %v4569_v46 = vld [vmem:[#allocation12_spill] sm:$0xff] }
 0x3f5   : > { %v1297_v11 = vsel %vm1296_vm5, %v2737_v25, %v1293_v44 }
 0x3f6   : > { %2471 = vmatmul.msk.f32.vlgmr.msrb.gmra.mxu2 %vm403_vm2, %v4567_v45  ;;  %2738 = vrcp.f32 %v3823_v2  ;;  %v1302_v53 = vsel %vm1299_vm6, %v1301_v51, %v1297_v11  ;;  %v1314_v22 = vand.u32 2147483648, %v3823_v2  ;;  %vm1308_vm8 = vweird.f32 %v3823_v2 }
 0x3f7   : > { %v1312_v31 = vand.u32 2147483647, %v3823_v2 }
 0x3f8   : > { %v1315_v60 = vor.u32 1.1754944e-38, %v1314_v22 }
 0x3f9   : > { %vm1313_vm10 = vcmp.eq.f32.partialorder %v1312_v31, 8.507059e+37 }
 0x3fb   : > { %1281 = vmatmul.f32.gmra.mxu3 %v832_v62 }
 0x3fc   : > { %v2739_v40 = vpop.eup %2738 }
 0x3fd   : > { %v1304_v13 = vmul.f32 %v2739_v40, %v3823_v2  ;;  %vm1309_vm7 = vweird.f32 %v2739_v40  ;;  %v828_v2 = vadd.f32 %v3542_v49, %v3741_v32 }
 0x3fe   : > { %2472 = vmatmul.msk.f32.gmra.mxu2 %vm403_vm2, %v4568_v16  ;;  %vm1310_vm9 = vmor %vm1308_vm8, %vm1309_vm7 }
 0x3ff   : > { %v1305_v34 = vsub.f32 1.0, %v1304_v13 }
 0x401   : > { %v1306_v38 = vmul.f32 %v2739_v40, %v1305_v34 }
 0x403   : > { %2488 = vmatmul.msk.f32.vlgmr.msrb.gmra.mxu3 %vm403_vm2, %v4567_v45  ;;  %v1307_v50 = vadd.f32 %v2739_v40, %v1306_v38 }
 0x405   : > { %v1311_v36 = vsel %vm1310_vm9, %v2739_v40, %v1307_v50 }
 0x406   : > { %2473 = vmatmul.msk.f32.gmra.mxu2 %vm403_vm2, %v4569_v46  ;;  %v1316_v26 = vsel %vm1313_vm10, %v1315_v60, %v1311_v36 }
 0x40b   : > { %2489 = vmatmul.msk.f32.gmra.mxu3 %vm403_vm2, %v4568_v16 }
 0x40e   : > { %2474 = vmatmul.msk.f32.gmra.mxu2 %vm403_vm2, %v4570_v33 }
 0x413   : > { %2490 = vmatmul.msk.f32.gmra.mxu3 %vm403_vm2, %v4569_v46  ;;  %v2882_v46 = vld [vmem:[%s3059_s12 + $0x8] sm:$0xff] }
 0x416   : > { %2475 = vmatmul.msk.f32.gmra.mxu2 %vm403_vm2, %v4571_v10 }
 0x41b   : > { %2491 = vmatmul.msk.f32.gmra.mxu3 %vm403_vm2, %v4570_v33 }
 0x41e   : > { %2476 = vmatmul.msk.f32.gmra.mxu2 %vm403_vm2, %v4572_v27 }
 0x423   : > { %2492 = vmatmul.msk.f32.gmra.mxu3 %vm403_vm2, %v4571_v10  ;;  %v1238_v10 = vmul.f32 %v3751_v63, %v828_v2 }
 0x426   : > { %2477 = vmatmul.msk.f32.gmra.mxu2 %vm403_vm2, %v4573_v52 }
 0x42b   : > { %2493 = vmatmul.msk.f32.gmra.mxu3 %vm403_vm2, %v4572_v27 }
 0x42e   : > { %2478 = vmatmul.msk.f32.gmra.mxu2 %vm403_vm2, %v4574_v37 }
 0x433   : > { %2494 = vmatmul.msk.f32.gmra.mxu3 %vm403_vm2, %v4573_v52 }
 0x436   : > { %2479 = vmatmul.msk.f32.gmra.mxu2 %vm403_vm2, %v4575_v18 }
 0x43b   : > { %2495 = vmatmul.msk.f32.gmra.mxu3 %vm403_vm2, %v4574_v37 }
 0x43e   : > { %2480 = vmatmul.msk.f32.gmra.mxu2 %vm403_vm2, %v4576_v15 }
 0x443   : > { %2496 = vmatmul.msk.f32.gmra.mxu3 %vm403_vm2, %v4575_v18 }
 0x446   : > { %2481 = vmatmul.msk.f32.gmra.mxu2 %vm403_vm2, %v4577_v28 }
 0x44b   : > { %2497 = vmatmul.msk.f32.gmra.mxu3 %vm403_vm2, %v4576_v15 }
 0x44e   : > { %2482 = vmatmul.msk.f32.gmra.mxu2 %vm403_vm2, %v4578_v5 }
 0x453   : > { %2498 = vmatmul.msk.f32.gmra.mxu3 %vm403_vm2, %v4577_v28  ;;  %v2883_v28 = vld [vmem:[%s3059_s12 + $0x18] sm:$0xff] }
 0x456   : > { %2483 = vmatmul.msk.f32.gmra.mxu2 %vm403_vm2, %v4579_v19 }
 0x45b   : > { %2499 = vmatmul.msk.f32.gmra.mxu3 %vm403_vm2, %v4578_v5 }
 0x45e   : > { %2484 = vmatmul.msk.f32.gmra.mxu2 %vm403_vm2, %v4580_v59 }
 0x463   : > { %2500 = vmatmul.msk.f32.gmra.mxu3 %vm403_vm2, %v4579_v19 }
 0x466   : > { %2485 = vmatmul.msk.f32.gmra.mxu2 %vm403_vm2, %v4581_v35 }
 0x469   : > { %v1256_v9 = vpop.f32.mrf.mxu2 }
 0x46a   : > { %v1285_v3 = vadd.f32 %v1256_v9, %v1235_v48 }
 0x46b   : > { %2501 = vmatmul.msk.f32.gmra.mxu3 %vm403_vm2, %v4580_v59 }
 0x46c   : > { %v1317_v42 = vmul.f32 %v1302_v53, %v1285_v3 }
 0x46e   : > { %v1322_v4 = vmul.f32 %v1321_v1, %v1317_v42  ;;  %2486 = vmatmul.msk.f32.gmra.mxu2 %vm403_vm2, %v4582_v41 }
 0x470   : > { %v1326_v55 = vadd.f32 %v2880_v7, %v1322_v4 }
 0x471   : > { %v1259_v43 = vpop.f32.mrf.mxu2 }
 0x472   : > { %2292 = vst [vmem:[%s3909_s9] sm:$0xff] %v1326_v55  ;;  %v1287_v61 = vadd.f32 %v1259_v43, %v1237_v12 }
 0x473   : > { %2502 = vmatmul.msk.f32.gmra.mxu3 %vm403_vm2, %v4581_v35 }
 0x474   : > { %v1319_v30 = vmul.f32 %v1302_v53, %v1287_v61 }
 0x476   : > { %v1324_v23 = vmul.f32 %v1321_v1, %v1319_v30  ;;  %v1279_v54 = vpop.f32.mrf.mxu3 }
 0x477   : > { %v1286_v17 = vadd.f32 %v1279_v54, %v1236_v20 }
 0x478   : > { %v1328_v57 = vadd.f32 %v2881_v21, %v1324_v23 }
 0x479   : > { %v3921_v62 = vpop.f32.mrf.mxu2  ;;  %v1318_v45 = vmul.f32 %v1316_v26, %v1286_v17 }
 0x47a   : > { %2294 = vst [vmem:[%s3909_s9 + $0x10] sm:$0xff] %v1328_v57 }
 0x47b   : > { %v1323_v16 = vmul.f32 %v1321_v1, %v1318_v45  ;;  %2503 = vmatmul.msk.f32.gmra.mxu3 %vm403_vm2, %v4582_v41 }
 0x47d   : > { %v1327_v33 = vadd.f32 %v2882_v46, %v1323_v16 }
 0x47e   : > { %v1282_v52 = vpop.f32.mrf.mxu3 }
 0x47f   : > { %2293 = vst [vmem:[%s3909_s9 + $0x8] sm:$0xff] %v1327_v33  ;;  %v1288_v37 = vadd.f32 %v1282_v52, %v1238_v10 }
 0x481   : > { %v3930_v27 = vpop.f32.mrf.mxu2  ;;  %v1320_v18 = vmul.f32 %v1316_v26, %v1288_v37 }
 0x483   : > { %v1325_v15 = vmul.f32 %v1321_v1, %v1320_v18 }
 0x485   : > { %v1329_v5 = vadd.f32 %v2883_v28, %v1325_v15 }
 0x486   : > { %v3936_v49 = vpop.f32.mrf.mxu3 }
 0x487   : > { %2295 = vst [vmem:[%s3909_s9 + $0x18] sm:$0xff] %v1329_v5 }
 0x489   : > { %v3934_v25 = vpop.f32.mrf.mxu2 }
 0x48a   : > { %v1552_v34 = vmax.f32 %v3921_v62, %v3934_v25 }
 0x48e   : > { %v3941_v19 = vpop.f32.mrf.mxu3 }
 0x491   : > { %v3939_v32 = vpop.f32.mrf.mxu2 }
 0x492   : > { %v1553_v8 = vmax.f32 %v3930_v27, %v3939_v32 }
 0x496   : > { %v3945_v63 = vpop.f32.mrf.mxu3 }
 0x497   : > { %v1573_v2 = vmax.f32 %v3936_v49, %v3945_v63 }
 0x499   : > { %v3943_v14 = vpop.f32.mrf.mxu2 }
 0x49a   : > { %v1554_v4 = vmax.f32 %v1552_v34, %v3943_v14 }
 0x49e   : > { %v3949_v59 = vpop.f32.mrf.mxu3 }
 0x49f   : > { %v1574_v26 = vmax.f32 %v3941_v19, %v3949_v59 }
 0x4a1   : > { %v3947_v56 = vpop.f32.mrf.mxu2 }
 0x4a2   : > { %v1555_v41 = vmax.f32 %v1553_v8, %v3947_v56 }
 0x4a6   : > { %v3953_v44 = vpop.f32.mrf.mxu3 }
 0x4a7   : > { %v1575_v33 = vmax.f32 %v1573_v2, %v3953_v44 }
 0x4a9   : > { %v3951_v47 = vpop.f32.mrf.mxu2 }
 0x4aa   : > { %v1556_v55 = vmax.f32 %v1554_v4, %v3951_v47 }
 0x4ae   : > { %v3957_v40 = vpop.f32.mrf.mxu3 }
 0x4af   : > { %v1576_v16 = vmax.f32 %v1574_v26, %v3957_v40 }
 0x4b1   : > { %v3955_v39 = vpop.f32.mrf.mxu2 }
 0x4b2   : > { %v1557_v12 = vmax.f32 %v1555_v41, %v3955_v39 }
 0x4b6   : > { %v3961_v35 = vpop.f32.mrf.mxu3 }
 0x4b7   : > { %v1577_v37 = vmax.f32 %v1575_v33, %v3961_v35 }
 0x4b9   : > { %v3959_v0 = vpop.f32.mrf.mxu2 }
 0x4ba   : > { %v1558_v43 = vmax.f32 %v1556_v55, %v3959_v0 }
 0x4be   : > { %v3965_v48 = vpop.f32.mrf.mxu3 }
 0x4bf   : > { %v1578_v10 = vmax.f32 %v1576_v16, %v3965_v48 }
 0x4c1   : > { %v3963_v6 = vpop.f32.mrf.mxu2 }
 0x4c2   : > { %v1559_v61 = vmax.f32 %v1557_v12, %v3963_v6 }
 0x4c6   : > { %v3969_v9 = vpop.f32.mrf.mxu3 }
 0x4c7   : > { %v1579_v5 = vmax.f32 %v1577_v37, %v3969_v9 }
 0x4c9   : > { %v3967_v11 = vpop.f32.mrf.mxu2 }
 0x4ca   : > { %v1560_v30 = vmax.f32 %v1558_v43, %v3967_v11 }
 0x4ce   : > { %v3973_v13 = vpop.f32.mrf.mxu3 }
 0x4cf   : > { %v1580_v18 = vmax.f32 %v1578_v10, %v3973_v13 }
 0x4d1   : > { %v3971_v51 = vpop.f32.mrf.mxu2 }
 0x4d2   : > { %v1561_v50 = vmax.f32 %v1559_v61, %v3971_v51 }
 0x4d6   : > { %v3977_v53 = vpop.f32.mrf.mxu3 }
 0x4d7   : > { %v1581_v41 = vmax.f32 %v1579_v5, %v3977_v53 }
 0x4d9   : > { %v3975_v3 = vpop.f32.mrf.mxu2 }
 0x4da   : > { %v1562_v22 = vmax.f32 %v1560_v30, %v3975_v3 }
 0x4de   : > { %v3981_v42 = vpop.f32.mrf.mxu3 }
 0x4df   : > { %v1582_v34 = vmax.f32 %v1580_v18, %v3981_v42 }
 0x4e1   : > { %v3979_v1 = vpop.f32.mrf.mxu2 }
 0x4e2   : > { %v1563_v23 = vmax.f32 %v1561_v50, %v3979_v1 }
 0x4e6   : > { %v3993_v38 = vpop.f32.mrf.mxu3 }
 0x4e9   : > { %v3989_v7 = vpop.f32.mrf.mxu2 }
 0x4ea   : > { %v1564_v21 = vmax.f32 %v1562_v22, %v3989_v7 }
 0x4ee   : > { %v4003_v31 = vpop.f32.mrf.mxu3 }
 0x4ef   : > { %v1584_v55 = vmax.f32 %v1582_v34, %v4003_v31 }
 0x4f1   : > { %v4001_v58 = vpop.f32.mrf.mxu2 }
 0x4f2   : > { %v1565_v57 = vmax.f32 %v1563_v23, %v4001_v58 }
 0x4f4   : > { %v1566_v20 = vmax.f32 %v1564_v21, %v1565_v57 }
 0x4f6   : > { %v1567_v36 = vrot.slane %v1566_v20, 4  ;;  %v4007_v60 = vpop.f32.mrf.mxu3 }
 0x4f8   : > { %v1568_v54 = vmax.f32 %v1566_v20, %v1567_v36 }
 0x4fa   : > { %v1569_v17 = vrot.slane %v1568_v54, 2 }
 0x4fc   : > { %v1570_v45 = vmax.f32 %v1568_v54, %v1569_v17 }
 0x4fe   : > { %v1571_v46 = vrot.slane %v1570_v45, 1  ;;  %v4028_v4 = vpop.f32.mrf.mxu3 }
 0x4ff   : > { %v1586_v50 = vmax.f32 %v1584_v55, %v4028_v4 }
 0x500   : > { %v4016_v52 = vmax.f32 %v1570_v45, %v1571_v46 }
 0x502   : > { %v1600_v15 = vsub.f32 %v3921_v62, %v4016_v52  ;;  %v1602_v28 = vsub.f32 %v3930_v27, %v4016_v52  ;;  %v1604_v8 = vsub.f32 %v3934_v25, %v4016_v52  ;;  %v1606_v12 = vsub.f32 %v3939_v32, %v4016_v52 }
 0x503   : > { %v1583_v27 = vmax.f32 %v1581_v41, %v3993_v38  ;;  %v1608_v61 = vsub.f32 %v3943_v14, %v4016_v52  ;;  %v1610_v22 = vsub.f32 %v3947_v56, %v4016_v52  ;;  %v1612_v32 = vsub.f32 %v3951_v47, %v4016_v52 }
 0x504   : > { %v1632_v62 = vmul.f32 1.442695, %v1600_v15  ;;  %v1636_v43 = vmul.f32 1.442695, %v1602_v28  ;;  %v1640_v30 = vmul.f32 1.442695, %v1604_v8  ;;  %v1614_v14 = vsub.f32 %v3955_v39, %v4016_v52 }
 0x505   : > { %v1585_v25 = vmax.f32 %v1583_v27, %v4007_v60  ;;  %v1644_v23 = vmul.f32 1.442695, %v1606_v12  ;;  %v1648_v21 = vmul.f32 1.442695, %v1608_v61  ;;  %v1652_v20 = vmul.f32 1.442695, %v1610_v22 }
 0x506   : > { %2740 = vpow2.f32 %v1632_v62  ;;  %v1616_v17 = vsub.f32 %v3959_v0, %v4016_v52  ;;  %v1630_v26 = vsub.f32 %v4001_v58, %v4016_v52  ;;  %v1656_v47 = vmul.f32 1.442695, %v1612_v32 }
 0x507   : > { %2742 = vpow2.f32 %v1636_v43  ;;  %v1587_v57 = vmax.f32 %v1585_v25, %v1586_v50  ;;  %v1618_v2 = vsub.f32 %v3963_v6, %v4016_v52  ;;  %v1628_v46 = vsub.f32 %v3989_v7, %v4016_v52 }
 0x508   : > { %2744 = vpow2.f32 %v1640_v30  ;;  %v1660_v0 = vmul.f32 1.442695, %v1614_v14  ;;  %v1620_v58 = vsub.f32 %v3967_v11, %v4016_v52  ;;  %v1664_v10 = vmul.f32 1.442695, %v1616_v17 }
 0x509   : > { %2746 = vpow2.f32 %v1644_v23  ;;  %v1588_v36 = vrot.slane %v1587_v57, 4  ;;  %v1626_v6 = vsub.f32 %v3979_v1, %v4016_v52  ;;  %v1692_v15 = vmul.f32 1.442695, %v1630_v26 }
 0x50a   : > { %2748 = vpow2.f32 %v1648_v21  ;;  %v1622_v7 = vsub.f32 %v3971_v51, %v4016_v52  ;;  %v1668_v5 = vmul.f32 1.442695, %v1618_v2  ;;  %v1624_v11 = vsub.f32 %v3975_v3, %v4016_v52 }
 0x50b   : > { %v1589_v45 = vmax.f32 %v1587_v57, %v1588_v36  ;;  %2750 = vpow2.f32 %v1652_v20  ;;  %v1688_v41 = vmul.f32 1.442695, %v1628_v46  ;;  %v1672_v12 = vmul.f32 1.442695, %v1620_v58 }
 0x50c   : > { %v4045_v54 = vpop.eup %2740  ;;  %2752 = vpow2.f32 %v1656_v47  ;;  %v1684_v43 = vmul.f32 1.442695, %v1626_v6  ;;  %v1676_v27 = vmul.f32 1.442695, %v1622_v7  ;;  %v1680_v3 = vmul.f32 1.442695, %v1624_v11 }
 0x50d   : > { %v4049_v56 = vpop.eup %2742  ;;  %v1590_v33 = vrot.slane %v1589_v45, 2  ;;  %2754 = vpow2.f32 %v1660_v0 }
 0x50e   : > { %v1698_v39 = vadd.f32 %v4049_v56, %v4045_v54  ;;  %v4057_v16 = vpop.eup %2744  ;;  %2756 = vpow2.f32 %v1664_v10 }
 0x50f   : > { %v4064_v18 = vpop.eup %2746  ;;  %v1591_v28 = vmax.f32 %v1589_v45, %v1590_v33  ;;  %2758 = vpow2.f32 %v1692_v15 }
 0x510   : > { %v1699_v37 = vadd.f32 %v4057_v16, %v1698_v39  ;;  %v4071_v8 = vpop.eup %2748  ;;  %2760 = vpow2.f32 %v1668_v5 }
 0x511   : > { %v1592_v55 = vrot.slane %v1591_v28, 1  ;;  %v4076_v62 = vpop.eup %2750  ;;  %2762 = vpow2.f32 %v1688_v41 }
 0x512   : > { %v1700_v34 = vadd.f32 %v4064_v18, %v1699_v37  ;;  %v4081_v30 = vpop.eup %2752  ;;  %2764 = vpow2.f32 %v1672_v12 }
 0x513   : > { %v4078_v51 = vmax.f32 %v1591_v28, %v1592_v55  ;;  %v4090_v32 = vpop.eup %2754  ;;  %2766 = vpow2.f32 %v1684_v43 }
 0x514   : > { %v1701_v1 = vadd.f32 %v4071_v8, %v1700_v34  ;;  %v4092_v21 = vpop.eup %2756  ;;  %2768 = vpow2.f32 %v1676_v27 }
 0x515   : > { %v1601_v50 = vsub.f32 %v3936_v49, %v4078_v51  ;;  %v1603_v25 = vsub.f32 %v3941_v19, %v4078_v51  ;;  %v1605_v23 = vsub.f32 %v3945_v63, %v4078_v51  ;;  %v1607_v49 = vsub.f32 %v3949_v59, %v4078_v51  ;;  %v2759_v14 = vpop.eup %2758 }
 0x516   : > { %v1702_v61 = vadd.f32 %v4076_v62, %v1701_v1  ;;  %2770 = vpow2.f32 %v1680_v3  ;;  %v2761_v36 = vpop.eup %2760  ;;  %v1609_v63 = vsub.f32 %v3953_v44, %v4078_v51  ;;  %1742 = vmatpush.msrb.mxu0 %v2759_v14  ;;  %v1611_v39 = vsub.f32 %v3957_v40, %v4078_v51 }
 0x517   : > { %v1634_v19 = vmul.f32 1.442695, %v1601_v50  ;;  %v1638_v20 = vmul.f32 1.442695, %v1603_v25  ;;  %v1642_v26 = vmul.f32 1.442695, %v1605_v23  ;;  %v2763_v47 = vpop.eup %2762  ;;  %v1613_v58 = vsub.f32 %v3961_v35, %v4078_v51 }
 0x518   : > { %v1703_v22 = vadd.f32 %v4081_v30, %v1702_v61  ;;  %v2765_v45 = vpop.eup %2764  ;;  %v1646_v59 = vmul.f32 1.442695, %v1607_v49  ;;  %1743 = vmatpush.msrb.mxu0 %v2763_v47  ;;  %v1650_v44 = vmul.f32 1.442695, %v1609_v63  ;;  %v1615_v6 = vsub.f32 %v3965_v48, %v4078_v51 }
 0x519   : > { %2772 = vpow2.f32 %v1634_v19  ;;  %v2767_v46 = vpop.eup %2766  ;;  %v1654_v15 = vmul.f32 1.442695, %v1611_v39  ;;  %v1617_v28 = vsub.f32 %v3969_v9, %v4078_v51  ;;  %v1631_v35 = vsub.f32 %v4028_v4, %v4078_v51 }
 0x51a   : > { %v1704_v57 = vadd.f32 %v4090_v32, %v1703_v22  ;;  %2774 = vpow2.f32 %v1638_v20  ;;  %v2769_v0 = vpop.eup %2768  ;;  %1744 = vmatpush.msrb.mxu0 %v2767_v46  ;;  %v1658_v34 = vmul.f32 1.442695, %v1613_v58  ;;  %v1619_v48 = vsub.f32 %v3973_v13, %v4078_v51  ;;  %v1811_v58 = vpop.trf.xlu1 }
 0x51b   : > { %2776 = vpow2.f32 %v1642_v26  ;;  %v1629_v9 = vsub.f32 %v4007_v60, %v4078_v51  ;;  %v1662_v12 = vmul.f32 1.442695, %v1615_v6  ;;  %v1621_v4 = vsub.f32 %v3977_v53, %v4078_v51 }
 0x51c   : > { %v1705_v17 = vadd.f32 %v4092_v21, %v1704_v57  ;;  %v2771_v10 = vpop.eup %2770  ;;  %2778 = vpow2.f32 %v1646_v59  ;;  %v1666_v1 = vmul.f32 1.442695, %v1617_v28  ;;  %v1627_v61 = vsub.f32 %v4003_v31, %v4078_v51 }
 0x51d   : > { %1745 = vmatpush.msrb.mxu0 %v2771_v10  ;;  %2780 = vpow2.f32 %v1650_v44  ;;  %v1694_v3 = vmul.f32 1.442695, %v1631_v35  ;;  %v1623_v60 = vsub.f32 %v3981_v42, %v4078_v51  ;;  %v1670_v50 = vmul.f32 1.442695, %v1619_v48 }
 0x51e   : > { %v1706_v2 = vadd.f32 %v2761_v36, %v1705_v17  ;;  %2782 = vpow2.f32 %v1654_v15  ;;  %v1625_v23 = vsub.f32 %v3993_v38, %v4078_v51  ;;  %v1690_v57 = vmul.f32 1.442695, %v1629_v9 }
 0x51f   : > { %v4106_v40 = vpop.eup %2772  ;;  %1746 = vmatpush.msrb.mxu0 %v2769_v0  ;;  %2784 = vpow2.f32 %v1658_v34  ;;  %v1674_v31 = vmul.f32 1.442695, %v1621_v4  ;;  %v1686_v42 = vmul.f32 1.442695, %v1627_v61  ;;  %v1678_v20 = vmul.f32 1.442695, %v1623_v60 }
 0x520   : > { %v1707_v33 = vadd.f32 %v2765_v45, %v1706_v2  ;;  %v4110_v7 = vpop.eup %2774  ;;  %2786 = vpow2.f32 %v1662_v12  ;;  %v1682_v17 = vmul.f32 1.442695, %v1625_v23 }
 0x521   : > { %v1719_v11 = vadd.f32 %v4110_v7, %v4106_v40  ;;  %v4118_v41 = vpop.eup %2776  ;;  %1747 = vmatpush.msrb.mxu0 %v2765_v45  ;;  %2788 = vpow2.f32 %v1666_v1 }
 0x522   : > { %v1708_v37 = vadd.f32 %v2769_v0, %v1707_v33  ;;  %v4125_v27 = vpop.eup %2778  ;;  %2790 = vpow2.f32 %v1694_v3 }
 0x523   : > { %v1720_v43 = vadd.f32 %v4118_v41, %v1719_v11  ;;  %1748 = vmatpush.msrb.mxu0 %v2761_v36  ;;  %v4132_v22 = vpop.eup %2780  ;;  %2792 = vpow2.f32 %v1670_v50 }
 0x524   : > { %v1709_v5 = vadd.f32 %v2771_v10, %v1708_v37  ;;  %v2783_v19 = vpop.eup %2782  ;;  %2794 = vpow2.f32 %v1690_v57  ;;  %v1812_v37 = vpop.trf.xlu1 }
 0x525   : > { %v1721_v25 = vadd.f32 %v4125_v27, %v1720_v43  ;;  %1749 = vmatpush.msrb.mxu0 %v4092_v21  ;;  %v2785_v36 = vpop.eup %2784  ;;  %2796 = vpow2.f32 %v1674_v31 }
 0x526   : > { %v1710_v55 = vadd.f32 %v2767_v46, %v1709_v5  ;;  %v2787_v21 = vpop.eup %2786  ;;  %2798 = vpow2.f32 %v1686_v42 }
 0x527   : > { %v1722_v49 = vadd.f32 %v4132_v22, %v1721_v25  ;;  %1750 = vmatpush.msrb.mxu0 %v4090_v32  ;;  %v2789_v63 = vpop.eup %2788  ;;  %2800 = vpow2.f32 %v1678_v20 }
 0x528   : > { %v1711_v13 = vadd.f32 %v2763_v47, %v1710_v55  ;;  %v2791_v47 = vpop.eup %2790  ;;  %2802 = vpow2.f32 %v1682_v17 }
 0x529   : > { %1751 = vmatpush.msrb.mxu0 %v4081_v30  ;;  %v2793_v32 = vpop.eup %2792  ;;  %1765 = vmatpush.msrb.mxu1 %v2791_v47 }
 0x52a   : > { %v4134_v53 = vadd.f32 %v2759_v14, %v1711_v13  ;;  %v1723_v14 = vadd.f32 %v2783_v19, %v1722_v49  ;;  %v2795_v2 = vpop.eup %2794 }
 0x52b   : > { %1752 = vmatpush.msrb.mxu0 %v4076_v62  ;;  %v2797_v30 = vpop.eup %2796  ;;  %1766 = vmatpush.msrb.mxu1 %v2795_v2 }
 0x52c   : > { %v1724_v38 = vadd.f32 %v2785_v36, %v1723_v14  ;;  %v2799_v59 = vpop.eup %2798 }
 0x52d   : > { %1753 = vmatpush.msrb.mxu0 %v4071_v8  ;;  %v2801_v62 = vpop.eup %2800  ;;  %1767 = vmatpush.msrb.mxu1 %v2799_v59  ;;  %v1334_v8 = vld [vmem:[#allocation2 + $0x60] sm:$0xff] }
 0x52e   : > { %v1725_v26 = vadd.f32 %v2787_v21, %v1724_v38  ;;  %v2803_v0 = vpop.eup %2802 }
 0x52f   : > { %1754 = vmatpush.msrb.mxu0 %v4064_v18  ;;  %1768 = vmatpush.msrb.mxu1 %v2803_v0 }
 0x530   : > { %v1726_v45 = vadd.f32 %v2789_v63, %v1725_v26 }
 0x531   : > { %1755 = vmatpush.msrb.mxu0 %v4057_v16  ;;  %1769 = vmatpush.msrb.mxu1 %v2801_v62 }
 0x532   : > { %v1727_v39 = vadd.f32 %v2793_v32, %v1726_v45 }
 0x533   : > { %1756 = vmatpush.msrb.mxu0 %v4049_v56  ;;  %1770 = vmatpush.msrb.mxu1 %v2797_v30  ;;  %v1335_v56 = vld [vmem:[#allocation2 + $0x78] sm:$0xff] }
 0x534   : > { %v1728_v46 = vadd.f32 %v2797_v30, %v1727_v39 }
 0x535   : > { %1757 = vmatpush.msrb.mxu0 %v4045_v54  ;;  %1771 = vmatpush.msrb.mxu1 %v2793_v32  ;;  %v1813_v54 = vpop.trf.xlu1 }
 0x536   : > { %v1729_v33 = vadd.f32 %v2801_v62, %v1728_v46  ;;  %1758 = vmatmul.f32.vlgmr.msrb.gmra.mxu0 %v1334_v8 }
 0x537   : > { %2504 = vmatpush.msk.msra.mxu0 %vm452_vm1, %v3814_v24  ;;  %1772 = vmatpush.msrb.mxu1 %v2789_v63 }
 0x538   : > { %v1730_v44 = vadd.f32 %v2803_v0, %v1729_v33 }
 0x539   : > { %1773 = vmatpush.msrb.mxu1 %v2787_v21 }
 0x53a   : > { %v1731_v18 = vadd.f32 %v2799_v59, %v1730_v44 }
 0x53b   : > { %1774 = vmatpush.msrb.mxu1 %v2785_v36 }
 0x53c   : > { %v1732_v16 = vadd.f32 %v2795_v2, %v1731_v18 }
 0x53d   : > { %1775 = vmatpush.msrb.mxu1 %v2783_v19  ;;  %v1814_v24 = vpop.trf.xlu1 }
 0x53e   : > { %v4150_v10 = vadd.f32 %v2791_v47, %v1732_v16  ;;  %1761 = vmatmul.f32.gmra.mxu0 %v1335_v56 }
 0x53f   : > { %1776 = vmatpush.msrb.mxu1 %v4132_v22 }
 0x541   : > { %1777 = vmatpush.msrb.mxu1 %v4125_v27 }
 0x543   : > { %1778 = vmatpush.msrb.mxu1 %v4118_v41 }
 0x545   : > { %1779 = vmatpush.msrb.mxu1 %v4110_v7  ;;  %v1815_v6 = vpop.trf.xlu1 }
 0x546   : > { %2505 = vmatmul.msk.f32.vlgmr.msra.gmra.mxu0 %vm403_vm2, %v1811_v58 }
 0x547   : > { %1780 = vmatpush.msrb.mxu1 %v4106_v40 }
 0x548   : > { %1781 = vmatmul.f32.vlgmr.msrb.gmra.mxu1 %v1334_v8 }
 0x549   : > { %2521 = vmatpush.msk.msra.mxu1 %vm452_vm1, %v3830_v29 }
 0x54d   : > { %v1816_v15 = vpop.trf.xlu1 }
 0x54e   : > { %2506 = vmatmul.msk.f32.gmra.mxu0 %vm403_vm2, %v1812_v37 }
 0x550   : > { %1784 = vmatmul.f32.gmra.mxu1 %v1335_v56 }
 0x555   : > { %v1817_v28 = vpop.trf.xlu1 }
 0x556   : > { %2507 = vmatmul.msk.f32.gmra.mxu0 %vm403_vm2, %v1813_v54 }
 0x558   : > { %2522 = vmatmul.msk.f32.vlgmr.msra.gmra.mxu1 %vm403_vm2, %v1811_v58 }
 0x55d   : > { %v1818_v40 = vpop.trf.xlu1 }
 0x55e   : > { %2508 = vmatmul.msk.f32.gmra.mxu0 %vm403_vm2, %v1814_v24 }
 0x560   : > { %2523 = vmatmul.msk.f32.gmra.mxu1 %vm403_vm2, %v1812_v37 }
 0x565   : > { %v1819_v29 = vpop.trf.xlu1 }
 0x566   : > { %2509 = vmatmul.msk.f32.gmra.mxu0 %vm403_vm2, %v1815_v6 }
 0x568   : > { %2524 = vmatmul.msk.f32.gmra.mxu1 %vm403_vm2, %v1813_v54 }
 0x56d   : > { %v1820_v7 = vpop.trf.xlu1 }
 0x56e   : > { %2510 = vmatmul.msk.f32.gmra.mxu0 %vm403_vm2, %v1816_v15 }
 0x570   : > { %2525 = vmatmul.msk.f32.gmra.mxu1 %vm403_vm2, %v1814_v24 }
 0x575   : > { %v1821_v5 = vpop.trf.xlu1 }
 0x576   : > { %2511 = vmatmul.msk.f32.gmra.mxu0 %vm403_vm2, %v1817_v28 }
 0x578   : > { %2526 = vmatmul.msk.f32.gmra.mxu1 %vm403_vm2, %v1815_v6  ;;  %v1713_v6 = vrot.slane %v4134_v53, 4 }
 0x57d   : > { %v1822_v35 = vpop.trf.xlu1 }
 0x57e   : > { %2512 = vmatmul.msk.f32.gmra.mxu0 %vm403_vm2, %v1818_v40 }
 0x580   : > { %2527 = vmatmul.msk.f32.gmra.mxu1 %vm403_vm2, %v1816_v15 }
 0x585   : > { %v1823_v34 = vpop.trf.xlu1 }
 0x586   : > { %2513 = vmatmul.msk.f32.gmra.mxu0 %vm403_vm2, %v1819_v29 }
 0x588   : > { %2528 = vmatmul.msk.f32.gmra.mxu1 %vm403_vm2, %v1817_v28 }
 0x58d   : > { %v1824_v48 = vpop.trf.xlu1 }
 0x58e   : > { %2514 = vmatmul.msk.f32.gmra.mxu0 %vm403_vm2, %v1820_v7 }
 0x590   : > { %2529 = vmatmul.msk.f32.gmra.mxu1 %vm403_vm2, %v1818_v40 }
 0x595   : > { %v1825_v11 = vpop.trf.xlu1 }
 0x596   : > { %2515 = vmatmul.msk.f32.gmra.mxu0 %vm403_vm2, %v1821_v5 }
 0x598   : > { %2530 = vmatmul.msk.f32.gmra.mxu1 %vm403_vm2, %v1819_v29  ;;  %v1714_v29 = vadd.f32 %v1713_v6, %v4134_v53 }
 0x59d   : > { %v1826_v9 = vpop.trf.xlu1 }
 0x59e   : > { %2516 = vmatmul.msk.f32.gmra.mxu0 %vm403_vm2, %v1822_v35 }
 0x5a0   : > { %2531 = vmatmul.msk.f32.gmra.mxu1 %vm403_vm2, %v1820_v7  ;;  %v1594_v7 = vsub.f32 -inf, %v4016_v52 }
 0x5a6   : > { %2517 = vmatmul.msk.f32.gmra.mxu0 %vm403_vm2, %v1823_v34 }
 0x5a8   : > { %2532 = vmatmul.msk.f32.gmra.mxu1 %vm403_vm2, %v1821_v5 }
 0x5ae   : > { %2518 = vmatmul.msk.f32.gmra.mxu0 %vm403_vm2, %v1824_v48 }
 0x5b0   : > { %2533 = vmatmul.msk.f32.gmra.mxu1 %vm403_vm2, %v1822_v35 }
 0x5b3   : > { %v4184_v41 = vpop.f32.mrf.mxu0 }
 0x5b6   : > { %2519 = vmatmul.msk.f32.gmra.mxu0 %vm403_vm2, %v1825_v11 }
 0x5b8   : > { %2534 = vmatmul.msk.f32.gmra.mxu1 %vm403_vm2, %v1823_v34  ;;  %v1715_v34 = vrot.slane %v1714_v29, 2 }
 0x5bb   : > { %v4188_v55 = vpop.f32.mrf.mxu0 }
 0x5be   : > { %2520 = vmatmul.msk.f32.gmra.mxu0 %vm403_vm2, %v1826_v9 }
 0x5c0   : > { %2535 = vmatmul.msk.f32.gmra.mxu1 %vm403_vm2, %v1824_v48  ;;  %v1596_v48 = vmul.f32 1.442695, %v1594_v7 }
 0x5c2   : > { %2804 = vpow2.f32 %v1596_v48 }
 0x5c3   : > { %v4192_v12 = vpop.f32.mrf.mxu0 }
 0x5c5   : > { %v4195_v4 = vpop.f32.mrf.mxu1 }
 0x5c8   : > { %2536 = vmatmul.msk.f32.gmra.mxu1 %vm403_vm2, %v1825_v11 }
 0x5cb   : > { %v4197_v1 = vpop.f32.mrf.mxu0 }
 0x5cd   : > { %v4200_v43 = vpop.f32.mrf.mxu1 }
 0x5d0   : > { %2537 = vmatmul.msk.f32.gmra.mxu1 %vm403_vm2, %v1826_v9 }
 0x5d3   : > { %v4202_v27 = vpop.f32.mrf.mxu0 }
 0x5d4   : > { %v2005_v32 = vmax.f32 %v4192_v12, %v4202_v27 }
 0x5d5   : > { %v4205_v13 = vpop.f32.mrf.mxu1 }
 0x5db   : > { %v4207_v61 = vpop.f32.mrf.mxu0 }
 0x5dc   : > { %v2006_v45 = vmax.f32 %v4197_v1, %v4207_v61 }
 0x5dd   : > { %v4209_v3 = vpop.f32.mrf.mxu1 }
 0x5e3   : > { %v4211_v60 = vpop.f32.mrf.mxu0 }
 0x5e4   : > { %v2007_v2 = vmax.f32 %v2005_v32, %v4211_v60 }
 0x5e5   : > { %v4213_v50 = vpop.f32.mrf.mxu1 }
 0x5e6   : > { %v2026_v32 = vmax.f32 %v4205_v13, %v4213_v50 }
 0x5eb   : > { %v4215_v25 = vpop.f32.mrf.mxu0 }
 0x5ec   : > { %v2008_v30 = vmax.f32 %v2006_v45, %v4215_v25 }
 0x5ed   : > { %v4217_v22 = vpop.f32.mrf.mxu1 }
 0x5ee   : > { %v2027_v11 = vmax.f32 %v4209_v3, %v4217_v22 }
 0x5f3   : > { %v4219_v23 = vpop.f32.mrf.mxu0 }
 0x5f4   : > { %v2009_v62 = vmax.f32 %v2007_v2, %v4219_v23 }
 0x5f5   : > { %v4221_v57 = vpop.f32.mrf.mxu1 }
 0x5f6   : > { %v2028_v53 = vmax.f32 %v2026_v32, %v4221_v57 }
 0x5fb   : > { %v4223_v31 = vpop.f32.mrf.mxu0 }
 0x5fc   : > { %v2010_v46 = vmax.f32 %v2008_v30, %v4223_v31 }
 0x5fd   : > { %v4225_v49 = vpop.f32.mrf.mxu1 }
 0x5fe   : > { %v2029_v45 = vmax.f32 %v2027_v11, %v4225_v49  ;;  %v1734_v11 = vrot.slane %v4150_v10, 4 }
 0x603   : > { %v4227_v19 = vpop.f32.mrf.mxu0 }
 0x604   : > { %v2011_v0 = vmax.f32 %v2009_v62, %v4227_v19  ;;  %v1716_v62 = vadd.f32 %v1715_v34, %v1714_v29  ;;  %v2805_v29 = vpop.eup %2804 }
 0x605   : > { %v4229_v42 = vpop.f32.mrf.mxu1  ;;  %v1696_v32 = vmul.f32 0.0, %v2805_v29 }
 0x60b   : > { %v4231_v20 = vpop.f32.mrf.mxu0 }
 0x60c   : > { %v2012_v33 = vmax.f32 %v2010_v46, %v4231_v20 }
 0x60d   : > { %v4233_v14 = vpop.f32.mrf.mxu1 }
 0x60e   : > { %v2031_v46 = vmax.f32 %v2029_v45, %v4233_v14 }
 0x613   : > { %v4235_v36 = vpop.f32.mrf.mxu0 }
 0x614   : > { %v2013_v8 = vmax.f32 %v2011_v0, %v4235_v36 }
 0x615   : > { %v4237_v17 = vpop.f32.mrf.mxu1 }
 0x61b   : > { %v4239_v38 = vpop.f32.mrf.mxu0 }
 0x61c   : > { %v2014_v58 = vmax.f32 %v2012_v33, %v4239_v38  ;;  %v2030_v33 = vmax.f32 %v2028_v53, %v4229_v42 }
 0x61d   : > { %v4241_v21 = vpop.f32.mrf.mxu1 }
 0x623   : > { %v4243_v63 = vpop.f32.mrf.mxu0 }
 0x624   : > { %v2015_v44 = vmax.f32 %v2013_v8, %v4243_v63  ;;  %v2033_v8 = vmax.f32 %v2031_v46, %v4241_v21 }
 0x625   : > { %v4245_v26 = vpop.f32.mrf.mxu1 }
 0x62b   : > { %v4247_v47 = vpop.f32.mrf.mxu0 }
 0x62c   : > { %v2016_v16 = vmax.f32 %v2014_v58, %v4247_v47 }
 0x62d   : > { %v4255_v39 = vpop.f32.mrf.mxu1 }
 0x62e   : > { %v2035_v6 = vmax.f32 %v2033_v8, %v4255_v39  ;;  %v1735_v8 = vadd.f32 %v1734_v11, %v4150_v10 }
 0x633   : > { %v4257_v59 = vpop.f32.mrf.mxu0 }
 0x634   : > { %v2017_v37 = vmax.f32 %v2015_v44, %v4257_v59 }
 0x635   : > { %v4266_v18 = vpop.f32.mrf.mxu1 }
 0x63b   : > { %v4269_v56 = vpop.f32.mrf.mxu0 }
 0x63c   : > { %v2018_v54 = vmax.f32 %v2016_v16, %v4269_v56  ;;  %v1717_v16 = vrot.slane %v1716_v62, 1 }
 0x63d   : > { %v4274_v28 = vpop.f32.mrf.mxu1 }
 0x63e   : > { %v2019_v24 = vmax.f32 %v2017_v37, %v2018_v54  ;;  %v2037_v7 = vmax.f32 %v2035_v6, %v4274_v28 }
 0x640   : > { %v2020_v15 = vrot.slane %v2019_v24, 4 }
 0x642   : > { %v2021_v40 = vmax.f32 %v2019_v24, %v2020_v15  ;;  %v2032_v24 = vmax.f32 %v2030_v33, %v4237_v17 }
 0x644   : > { %v2022_v5 = vrot.slane %v2021_v40, 2 }
 0x645   : > { %v4283_v2 = vpop.f32.mrf.mxu1 }
 0x646   : > { %v2023_v35 = vmax.f32 %v2021_v40, %v2022_v5  ;;  %v1595_v40 = vsub.f32 -inf, %v4078_v51 }
 0x648   : > { %v2024_v9 = vrot.slane %v2023_v35, 1 }
 0x64a   : > { %v2025_v30 = vmax.f32 %v2023_v35, %v2024_v9 }
 0x64c   : > { %v4288_v0 = vmax.f32 %v4016_v52, %v2025_v30 }
 0x64d   : > { %v4307_v5 = vpop.f32.mrf.mxu1 }
 0x64e   : > { %v2049_v58 = vsub.f32 %v4016_v52, %v4288_v0  ;;  %v2055_v44 = vsub.f32 %v4192_v12, %v4288_v0  ;;  %v2057_v37 = vsub.f32 %v4197_v1, %v4288_v0  ;;  %v2059_v54 = vsub.f32 %v4202_v27, %v4288_v0 }
 0x64f   : > { %v2061_v52 = vsub.f32 %v4207_v61, %v4288_v0  ;;  %v2034_v12 = vmax.f32 %v2032_v24, %v4245_v26  ;;  %v1718_v27 = vadd.f32 %v1717_v16, %v1716_v62  ;;  %v2063_v35 = vsub.f32 %v4211_v60, %v4288_v0 }
 0x650   : > { %v2051_v15 = vmul.f32 1.442695, %v2049_v58  ;;  %v2087_v1 = vmul.f32 1.442695, %v2055_v44  ;;  %v2091_v34 = vmul.f32 1.442695, %v2057_v37  ;;  %v2039_v61 = vmax.f32 %v2037_v7, %v4307_v5 }
 0x651   : > { %v2095_v48 = vmul.f32 1.442695, %v2059_v54  ;;  %v2036_v9 = vmax.f32 %v2034_v12, %v4266_v18  ;;  %v2065_v45 = vsub.f32 %v4215_v25, %v4288_v0  ;;  %v2099_v30 = vmul.f32 1.442695, %v2061_v52 }
 0x652   : > { %2806 = vpow2.f32 %v2051_v15  ;;  %v1740_v53 = vadd.f32 %v1718_v27, %v1696_v32  ;;  %v2067_v60 = vsub.f32 %v4219_v23, %v4288_v0  ;;  %v2103_v46 = vmul.f32 1.442695, %v2063_v35 }
 0x653   : > { %2808 = vpow2.f32 %v2087_v1  ;;  %v2038_v62 = vmax.f32 %v2036_v9, %v4283_v2  ;;  %v1598_v58 = vmul.f32 1.442695, %v1595_v40  ;;  %v2069_v16 = vsub.f32 %v4223_v31, %v4288_v0 }
 0x654   : > { %2810 = vpow2.f32 %v2091_v34  ;;  %v2107_v25 = vmul.f32 1.442695, %v2065_v45  ;;  %v2071_v24 = vsub.f32 %v4227_v19, %v4288_v0  ;;  %v2085_v10 = vsub.f32 %v4269_v56, %v4288_v0 }
 0x655   : > { %2812 = vpow2.f32 %v2095_v48  ;;  %v2040_v44 = vmax.f32 %v2038_v62, %v2039_v61  ;;  %v2111_v15 = vmul.f32 1.442695, %v2067_v60  ;;  %v2073_v31 = vsub.f32 %v4231_v20, %v4288_v0 }
 0x656   : > { %2814 = vpow2.f32 %v2099_v30  ;;  %v1736_v12 = vrot.slane %v1735_v8, 2  ;;  %v2083_v19 = vsub.f32 %v4257_v59, %v4288_v0  ;;  %v2115_v7 = vmul.f32 1.442695, %v2069_v16 }
 0x657   : > { %v2041_v23 = vrot.slane %v2040_v44, 4  ;;  %2816 = vpow2.f32 %v2103_v46  ;;  %v2075_v56 = vsub.f32 %v4235_v36, %v4288_v0  ;;  %v2119_v1 = vmul.f32 1.442695, %v2071_v24 }
 0x658   : > { %v2807_v33 = vpop.eup %2806  ;;  %2818 = vpow2.f32 %v1598_v58  ;;  %v2081_v34 = vsub.f32 %v4247_v47, %v4288_v0  ;;  %v2147_v48 = vmul.f32 1.442695, %v2085_v10  ;;  %v2077_v11 = vsub.f32 %v4239_v38, %v4288_v0 }
 0x659   : > { %v4322_v37 = vmul.f32 %v2807_v33, %v1740_v53  ;;  %v4324_v54 = vpop.eup %2808  ;;  %v2042_v52 = vmax.f32 %v2040_v44, %v2041_v23  ;;  %2820 = vpow2.f32 %v2107_v25  ;;  %v2123_v59 = vmul.f32 1.442695, %v2073_v31 }
 0x65a   : > { %v4328_v6 = vpop.eup %2810  ;;  %2822 = vpow2.f32 %v2111_v15  ;;  %v1737_v36 = vadd.f32 %v1736_v12, %v1735_v8  ;;  %v2079_v30 = vsub.f32 %v4243_v63, %v4288_v0  ;;  %v2143_v62 = vmul.f32 1.442695, %v2083_v19 }
 0x65b   : > { %v2153_v40 = vadd.f32 %v4328_v6, %v4324_v54  ;;  %v4336_v29 = vpop.eup %2812  ;;  %v2043_v35 = vrot.slane %v2042_v52, 2  ;;  %2824 = vpow2.f32 %v2115_v7  ;;  %v2127_v47 = vmul.f32 1.442695, %v2075_v56 }
 0x65c   : > { %v4343_v20 = vpop.eup %2814  ;;  %2826 = vpow2.f32 %v2119_v1  ;;  %v1788_v38 = vadd.f32 %v4184_v41, %v1696_v32  ;;  %v1790_v44 = vadd.f32 %v4188_v55, %v1696_v32  ;;  %v2139_v16 = vmul.f32 1.442695, %v2081_v34 }
 0x65d   : > { %v2154_v27 = vadd.f32 %v4336_v29, %v2153_v40  ;;  %v2044_v61 = vmax.f32 %v2042_v52, %v2043_v35  ;;  %v4350_v45 = vpop.eup %2816  ;;  %2828 = vpow2.f32 %v2147_v48  ;;  %v2131_v8 = vmul.f32 1.442695, %v2077_v11 }
 0x65e   : > { %v2819_v53 = vpop.eup %2818  ;;  %2830 = vpow2.f32 %v2123_v59  ;;  %v2135_v24 = vmul.f32 1.442695, %v2079_v30  ;;  %v4362_v23 = vmul.f32 %v2807_v33, %v1788_v38  ;;  %v4364_v10 = vmul.f32 %v2807_v33, %v1790_v44 }
 0x65f   : > { %v2155_v9 = vadd.f32 %v4343_v20, %v2154_v27  ;;  %v2045_v46 = vrot.slane %v2044_v61, 1  ;;  %v4355_v58 = vpop.eup %2820  ;;  %2832 = vpow2.f32 %v2143_v62  ;;  %v1738_v33 = vrot.slane %v1737_v36, 1 }
 0x660   : > { %v4360_v25 = vpop.eup %2822  ;;  %2834 = vpow2.f32 %v2127_v47  ;;  %v1697_v47 = vmul.f32 0.0, %v2819_v53 }
 0x661   : > { %v2156_v60 = vadd.f32 %v4350_v45, %v2155_v9  ;;  %v2046_v0 = vmax.f32 %v2044_v61, %v2045_v46  ;;  %v4370_v32 = vpop.eup %2824  ;;  %2836 = vpow2.f32 %v2139_v16  ;;  %v1739_v11 = vadd.f32 %v1738_v33, %v1737_v36 }
 0x662   : > { %v4372_v15 = vpop.eup %2826  ;;  %2838 = vpow2.f32 %v2131_v8  ;;  %v1789_v38 = vadd.f32 %v4195_v4, %v1697_v47  ;;  %v1791_v44 = vadd.f32 %v4200_v43, %v1697_v47 }
 0x663   : > { %v2157_v63 = vadd.f32 %v4355_v58, %v2156_v60  ;;  %v4368_v55 = vmax.f32 %v4078_v51, %v2046_v0  ;;  %v2829_v52 = vpop.eup %2828  ;;  %2840 = vpow2.f32 %v2135_v24  ;;  %v1741_v36 = vadd.f32 %v1739_v11, %v1697_v47 }
 0x664   : > { %v2831_v7 = vpop.eup %2830  ;;  %2201 = vmatpush.msra.mxu2 %v2829_v52 }
 0x665   : > { %v2158_v41 = vadd.f32 %v4360_v25, %v2157_v63  ;;  %v2050_v40 = vsub.f32 %v4078_v51, %v4368_v55  ;;  %v2056_v12 = vsub.f32 %v4205_v13, %v4368_v55  ;;  %v2058_v19 = vsub.f32 %v4209_v3, %v4368_v55  ;;  %v2833_v35 = vpop.eup %2832 }
 0x666   : > { %v2060_v27 = vsub.f32 %v4213_v50, %v4368_v55  ;;  %v2835_v34 = vpop.eup %2834  ;;  %v2062_v48 = vsub.f32 %v4217_v22, %v4368_v55  ;;  %2202 = vmatpush.msra.mxu2 %v2833_v35  ;;  %v2064_v30 = vsub.f32 %v4221_v57, %v4368_v55  ;;  %v2066_v46 = vsub.f32 %v4225_v49, %v4368_v55 }
 0x667   : > { %v2159_v31 = vadd.f32 %v4370_v32, %v2158_v41  ;;  %v2053_v1 = vmul.f32 1.442695, %v2050_v40  ;;  %v2837_v13 = vpop.eup %2836  ;;  %v2089_v59 = vmul.f32 1.442695, %v2056_v12  ;;  %v2093_v3 = vmul.f32 1.442695, %v2058_v19 }
 0x668   : > { %v2839_v9 = vpop.eup %2838  ;;  %v2097_v62 = vmul.f32 1.442695, %v2060_v27  ;;  %2203 = vmatpush.msra.mxu2 %v2837_v13  ;;  %v2101_v22 = vmul.f32 1.442695, %v2062_v48  ;;  %v2068_v57 = vsub.f32 %v4229_v42, %v4368_v55  ;;  %v2105_v53 = vmul.f32 1.442695, %v2064_v30 }
 0x669   : > { %v2160_v56 = vadd.f32 %v4372_v15, %v2159_v31  ;;  %2842 = vpow2.f32 %v2053_v1  ;;  %v2841_v50 = vpop.eup %2840  ;;  %v2070_v63 = vsub.f32 %v4233_v14, %v4368_v55  ;;  %v2109_v4 = vmul.f32 1.442695, %v2066_v46 }
 0x66a   : > { %2844 = vpow2.f32 %v2089_v59  ;;  %2204 = vmatpush.msra.mxu2 %v2841_v50  ;;  %v2072_v42 = vsub.f32 %v4237_v17, %v4368_v55  ;;  %v2086_v14 = vsub.f32 %v4307_v5, %v4368_v55  ;;  %v2113_v33 = vmul.f32 1.442695, %v2068_v57  ;;  %v1793_v57 = vld [vmem:[#allocation2 + $0x70] sm:$0xff] }
 0x66b   : > { %v2161_v51 = vadd.f32 %v2831_v7, %v2160_v56  ;;  %2846 = vpow2.f32 %v2093_v3  ;;  %v2074_v12 = vsub.f32 %v4241_v21, %v4368_v55  ;;  %v2084_v17 = vsub.f32 %v4283_v2, %v4368_v55 }
 0x66c   : > { %2848 = vpow2.f32 %v2097_v62  ;;  %2205 = vmatpush.msra.mxu2 %v2839_v9  ;;  %v2117_v27 = vmul.f32 1.442695, %v2070_v63  ;;  %v2076_v5 = vsub.f32 %v4245_v26, %v4368_v55  ;;  %v2078_v2 = vsub.f32 %v4255_v39, %v4368_v55 }
 0x66d   : > { %v2162_v61 = vadd.f32 %v2835_v34, %v2161_v51  ;;  %2850 = vpow2.f32 %v2101_v22  ;;  %v2082_v51 = vsub.f32 %v4274_v28, %v4368_v55  ;;  %v2080_v11 = vsub.f32 %v4266_v18, %v4368_v55 }
 0x66e   : > { %2206 = vmatpush.msra.mxu2 %v2835_v34  ;;  %2852 = vpow2.f32 %v2105_v53  ;;  %v2145_v59 = vmul.f32 1.442695, %v2084_v17  ;;  %v2129_v28 = vmul.f32 1.442695, %v2076_v5 }
 0x66f   : > { %v2163_v60 = vadd.f32 %v2839_v9, %v2162_v61  ;;  %v2843_v16 = vpop.eup %2842  ;;  %2854 = vpow2.f32 %v2109_v4  ;;  %v2141_v39 = vmul.f32 1.442695, %v2082_v51  ;;  %v2133_v61 = vmul.f32 1.442695, %v2078_v2 }
 0x670   : > { %v4396_v49 = vmul.f32 %v2843_v16, %v1741_v36  ;;  %v4398_v0 = vmul.f32 %v2843_v16, %v1789_v38  ;;  %v4400_v43 = vmul.f32 %v2843_v16, %v1791_v44  ;;  %v4402_v41 = vpop.eup %2844  ;;  %2207 = vmatpush.msra.mxu2 %v2831_v7  ;;  %v2121_v7 = vmul.f32 1.442695, %v2072_v42 }
 0x671   : > { %v2164_v8 = vadd.f32 %v2841_v50, %v2163_v60  ;;  %v4406_v31 = vpop.eup %2846  ;;  %2856 = vpow2.f32 %v2113_v33  ;;  %v2137_v18 = vmul.f32 1.442695, %v2080_v11  ;;  %v2283_v2 = vstv %s2469_s10 }
 0x672   : > { %v2174_v19 = vadd.f32 %v4406_v31, %v4402_v41  ;;  %v4414_v56 = vpop.eup %2848  ;;  %2208 = vmatpush.msra.mxu2 %v4372_v15  ;;  %v2125_v15 = vmul.f32 1.442695, %v2074_v12  ;;  %2858 = vpow2.f32 %v2117_v27 }
 0x673   : > { %v2165_v24 = vadd.f32 %v2837_v13, %v2164_v8  ;;  %v4422_v21 = vpop.eup %2850  ;;  %2860 = vpow2.f32 %v2121_v7 }
 0x674   : > { %2209 = vmatpush.msra.mxu2 %v4370_v32  ;;  %v4430_v26 = vpop.eup %2852 }
 0x675   : > { %v2166_v40 = vadd.f32 %v2833_v35, %v2165_v24  ;;  %v2175_v35 = vadd.f32 %v4414_v56, %v2174_v19  ;;  %v2855_v3 = vpop.eup %2854 }
 0x676   : > { %2210 = vmatpush.msra.mxu2 %v4360_v25 }
 0x677   : > { %v2167_v1 = vadd.f32 %v2829_v52, %v2166_v40  ;;  %v2149_v52 = vmul.f32 1.442695, %v2086_v14  ;;  %v2176_v48 = vadd.f32 %v4422_v21, %v2175_v35  ;;  %v2857_v62 = vpop.eup %2856 }
 0x678   : > { %2211 = vmatpush.msra.mxu2 %v4355_v58  ;;  %v2859_v55 = vpop.eup %2858 }
 0x679   : > { %v2168_v34 = vrot.slane %v2167_v1, 4  ;;  %v2177_v32 = vadd.f32 %v4430_v26, %v2176_v48  ;;  %2862 = vpow2.f32 %v2149_v52  ;;  %v2861_v60 = vpop.eup %2860 }
 0x67a   : > { %2864 = vpow2.f32 %v2125_v15  ;;  %2212 = vmatpush.msra.mxu2 %v4350_v45 }
 0x67b   : > { %v2169_v13 = vadd.f32 %v2168_v34, %v2167_v1  ;;  %v2178_v30 = vadd.f32 %v2855_v3, %v2177_v32  ;;  %2866 = vpow2.f32 %v2145_v59 }
 0x67c   : > { %2868 = vpow2.f32 %v2129_v28  ;;  %2213 = vmatpush.msra.mxu2 %v4343_v20 }
 0x67d   : > { %v2170_v9 = vrot.slane %v2169_v13, 2  ;;  %v2179_v25 = vadd.f32 %v2857_v62, %v2178_v30  ;;  %2870 = vpow2.f32 %v2141_v39 }
 0x67e   : > { %2872 = vpow2.f32 %v2133_v61  ;;  %2214 = vmatpush.msra.mxu2 %v4336_v29  ;;  %v2885_v61 = vld [vmem:[%s3059_s12 + $0x30] sm:$0xff] }
 0x67f   : > { %v2171_v50 = vadd.f32 %v2170_v9, %v2169_v13  ;;  %v2180_v46 = vadd.f32 %v2859_v55, %v2179_v25  ;;  %v2863_v58 = vpop.eup %2862  ;;  %2874 = vpow2.f32 %v2137_v18  ;;  %v2884_v13 = vld [vmem:[%s3059_s12 + $0x20] sm:$0xff] }
 0x680   : > { %v2865_v36 = vpop.eup %2864  ;;  %2224 = vmatpush.msra.mxu3 %v2863_v58  ;;  %2215 = vmatpush.msra.mxu2 %v4328_v6 }
 0x681   : > { %v2172_v47 = vrot.slane %v2171_v50, 1  ;;  %v2181_v38 = vadd.f32 %v2861_v60, %v2180_v46  ;;  %v2867_v44 = vpop.eup %2866 }
 0x682   : > { %v2869_v16 = vpop.eup %2868  ;;  %2225 = vmatpush.msra.mxu3 %v2867_v44  ;;  %2216 = vmatpush.msra.mxu2 %v4324_v54 }
 0x683   : > { %v2173_v22 = vadd.f32 %v2172_v47, %v2171_v50  ;;  %v2182_v8 = vadd.f32 %v2865_v36, %v2181_v38  ;;  %v2871_v20 = vpop.eup %2870  ;;  %2217 = vmatmul.f32.vlgmr.msra.gmra.mxu2 %v1793_v57 }
 0x684   : > { %v2873_v53 = vpop.eup %2872  ;;  %2226 = vmatpush.msra.mxu3 %v2871_v20 }
 0x685   : > { %v2195_v45 = vadd.f32 %v2173_v22, %v4322_v37  ;;  %v2183_v63 = vadd.f32 %v2869_v16, %v2182_v8  ;;  %v2875_v29 = vpop.eup %2874  ;;  %v1794_v37 = vld [vmem:[#allocation2 + $0x28] sm:$0xff] }
 0x686   : > { %2227 = vmatpush.msra.mxu3 %v2875_v29  ;;  %v2886_v22 = vld [vmem:[%s3059_s12 + $0x28] sm:$0xff] }
 0x687   : > { %v2184_v24 = vadd.f32 %v2873_v53, %v2183_v63  ;;  %2876 = vrcp.f32 %v2195_v45  ;;  %vm2256_vm12 = vweird.f32 %v2195_v45 }
 0x688   : > { %2228 = vmatpush.msra.mxu3 %v2873_v53 }
 0x689   : > { %v2185_v4 = vadd.f32 %v2875_v29, %v2184_v24 }
 0x68a   : > { %2229 = vmatpush.msra.mxu3 %v2869_v16  ;;  %v2887_v16 = vld [vmem:[%s3059_s12 + $0x38] sm:$0xff] }
 0x68b   : > { %v2186_v42 = vadd.f32 %v2871_v20, %v2185_v4  ;;  %2220 = vmatmul.f32.gmra.mxu2 %v1794_v37 }
 0x68c   : > { %2230 = vmatpush.msra.mxu3 %v2865_v36 }
 0x68d   : > { %v2187_v6 = vadd.f32 %v2867_v44, %v2186_v42  ;;  %v2877_v27 = vpop.eup %2876 }
 0x68e   : > { %2231 = vmatpush.msra.mxu3 %v2861_v60  ;;  %v2252_v5 = vmul.f32 %v2877_v27, %v2195_v45  ;;  %vm2257_vm11 = vweird.f32 %v2877_v27 }
 0x68f   : > { %v2188_v40 = vadd.f32 %v2863_v58, %v2187_v6  ;;  %vm2258_vm13 = vmor %vm2256_vm12, %vm2257_vm11 }
 0x690   : > { %2232 = vmatpush.msra.mxu3 %v2859_v55  ;;  %v2253_v7 = vsub.f32 1.0, %v2252_v5 }
 0x691   : > { %v2189_v14 = vrot.slane %v2188_v40, 4 }
 0x692   : > { %2233 = vmatpush.msra.mxu3 %v2857_v62  ;;  %v2254_v35 = vmul.f32 %v2877_v27, %v2253_v7 }
 0x693   : > { %v2190_v54 = vadd.f32 %v2189_v14, %v2188_v40 }
 0x694   : > { %2234 = vmatpush.msra.mxu3 %v2855_v3  ;;  %v2255_v34 = vadd.f32 %v2877_v27, %v2254_v35 }
 0x695   : > { %v2191_v33 = vrot.slane %v2190_v54, 2 }
 0x696   : > { %2235 = vmatpush.msra.mxu3 %v4430_v26 }
 0x697   : > { %v2192_v12 = vadd.f32 %v2191_v33, %v2190_v54 }
 0x698   : > { %2236 = vmatpush.msra.mxu3 %v4422_v21  ;;  %v2262_v21 = vand.u32 2147483648, %v2195_v45 }
 0x699   : > { %v2193_v19 = vrot.slane %v2192_v12, 1 }
 0x69a   : > { %2237 = vmatpush.msra.mxu3 %v4414_v56  ;;  %v2260_v56 = vand.u32 2147483647, %v2195_v45  ;;  %v2263_v51 = vor.u32 1.1754944e-38, %v2262_v21 }
 0x69b   : > { %v2194_v1 = vadd.f32 %v2193_v19, %v2192_v12 }
 0x69c   : > { %2238 = vmatpush.msra.mxu3 %v4406_v31  ;;  %vm2261_vm14 = vcmp.eq.f32.partialorder %v2260_v56, 8.507059e+37 }
 0x69d   : > { %v2196_v17 = vadd.f32 %v2194_v1, %v4396_v49  ;;  %v2259_v49 = vsel %vm2258_vm13, %v2877_v27, %v2255_v34 }
 0x69e   : > { %2239 = vmatpush.msra.mxu3 %v4402_v41  ;;  %v2264_v52 = vsel %vm2261_vm14, %v2263_v51, %v2259_v49 }
 0x69f   : > { %2240 = vmatmul.f32.vlgmr.msra.gmra.mxu3 %v1793_v57  ;;  %2878 = vrcp.f32 %v2196_v17  ;;  %v2276_v50 = vand.u32 2147483648, %v2196_v17  ;;  %vm2270_vm0 = vweird.f32 %v2196_v17  ;;  %v2274_v18 = vand.u32 2147483647, %v2196_v17 }
 0x6a1   : > { %v2277_v55 = vor.u32 1.1754944e-38, %v2276_v50  ;;  %vm2275_vm2 = vcmp.eq.f32.partialorder %v2274_v18, 8.507059e+37 }
 0x6a5   : > { %v2879_v26 = vpop.eup %2878 }
 0x6a6   : > { %v2266_v32 = vmul.f32 %v2879_v26, %v2196_v17  ;;  %vm2271_vm15 = vweird.f32 %v2879_v26 }
 0x6a7   : > { %2243 = vmatmul.f32.gmra.mxu3 %v1794_v37  ;;  %vm2272_vm1 = vmor %vm2270_vm0, %vm2271_vm15 }
 0x6a8   : > { %v2267_v39 = vsub.f32 1.0, %v2266_v32 }
 0x6aa   : > { %v2268_v30 = vmul.f32 %v2879_v26, %v2267_v39 }
 0x6ac   : > { %v2269_v62 = vadd.f32 %v2879_v26, %v2268_v30 }
 0x6ae   : > { %v2273_v25 = vsel %vm2272_vm1, %v2879_v26, %v2269_v62 }
 0x6af   : > { %v2278_v60 = vsel %vm2275_vm2, %v2277_v55, %v2273_v25 }
 0x706   : > { %v2218_v31 = vpop.f32.mrf.mxu2 }
 0x707   : > { %v2247_v41 = vadd.f32 %v2218_v31, %v4362_v23 }
 0x709   : > { %v2279_v15 = vmul.f32 %v2264_v52, %v2247_v41 }
 0x70b   : > { %v2284_v48 = vmul.f32 %v2283_v2, %v2279_v15 }
 0x70d   : > { %v2288_v11 = vadd.f32 %v2884_v13, %v2284_v48 }
 0x70e   : > { %v2221_v59 = vpop.f32.mrf.mxu2 }
 0x70f   : > { %2296 = vst [vmem:[%s3909_s9 + $0x20] sm:$0xff] %v2288_v11  ;;  %v2249_v28 = vadd.f32 %v2221_v59, %v4364_v10 }
 0x711   : > { %v2281_v3 = vmul.f32 %v2264_v52, %v2249_v28 }
 0x713   : > { %v2286_v9 = vmul.f32 %v2283_v2, %v2281_v3 }
 0x715   : > { %v2290_v23 = vadd.f32 %v2885_v61, %v2286_v9 }
 0x717   : > { %2298 = vst [vmem:[%s3909_s9 + $0x30] sm:$0xff] %v2290_v23 }
 0x722   : > { %v2241_v10 = vpop.f32.mrf.mxu3 }
 0x723   : > { %v2248_v47 = vadd.f32 %v2241_v10, %v4398_v0 }
 0x725   : > { %v2280_v46 = vmul.f32 %v2278_v60, %v2248_v47 }
 0x727   : > { %v2285_v58 = vmul.f32 %v2283_v2, %v2280_v46 }
 0x729   : > { %v2289_v36 = vadd.f32 %v2886_v22, %v2285_v58 }
 0x72a   : > { %v2244_v38 = vpop.f32.mrf.mxu3 }
 0x72b   : > { %2297 = vst [vmem:[%s3909_s9 + $0x28] sm:$0xff] %v2289_v36  ;;  %v2250_v44 = vadd.f32 %v2244_v38, %v4400_v43 }
 0x72d   : > { %v2282_v0 = vmul.f32 %v2278_v60, %v2250_v44 }
 0x72f   : > { %v2287_v45 = vmul.f32 %v2283_v2, %v2282_v0 }
 0x731   : > { %v2291_v8 = vadd.f32 %v2887_v16, %v2287_v45 }
 0x733   : > { %2299 = vst [vmem:[%s3909_s9 + $0x38] sm:$0xff] %v2291_v8 }
 0x734   : > { %2927 = shalt.err (!%p2924_p3)
}
 0x735   : > { %s2968_s12 = smov 256   ;;  %s2969_s7 = smov 16  }
 0x736   : > { %2553 = dma.vmem_to_hbm [thread:$0]  (%p3036_p5), %s2314_s16, 1024, %s2316_s17, %s2301_s0, %s2968_s12, %s2968_s12, %s2969_s7  }
 0x737 PF: > { %p2559_p4 = scmp.ge.s32.totalorder %s2964_s22, 2  ;;  %s2330_s8 = sand.u32 1, %s2952_s19  }
 0x738   : > { %s2331_s9 = scalar_lea.sflag [#allocation6], %s2330_s8 }
 0x739   : > { %p2556_p7 = pnand %p2559_p4, %p3040_p6 }
 0x73b   : > { %p2557_p8 = pneg %p2556_p7 }
 0x73d   : > { %2947 = dma.done.wait (%p2557_p8), %s2331_s9, 1024  }
 0x73e   : > { %2949 = vsyncadd (%p2557_p8), %s2331_s9, 4294966272  ;;  %p22_p9 = scmp.ge.s32.totalorder %s3023_s24, 4   ;;  %s4583_s19 = smov %s2956_s20 }
 0x73f   : > { %s4584_s20 = smov %s2960_s21  ;;  %s4585_s21 = smov %s3034_s27 }
 0x740   : > { %s4586_s22 = smov %s3023_s24  ;;  %24 = sbr.rel (!%p22_p9) target bundleno = 9 (0x9), region = 68 }
 0x745   :  { %2337 = vsyncpa [#allocation6], 1 }
 0x746   :  { %2339 = vsyncpa [#allocation6 + $0x1], 1 }

</bundles_post_ra>
